<compile_context>
chip_gen: v7x
topology: tpu7x:2x2x1
jax: 0.10.0
libtpu: 0.0.40
codegen_flags: <defaults>
</compile_context>

<pallas_src>
import math
import functools

import jax
import jax.numpy as jnp
from jax.experimental import pallas as pl
from jax.experimental.pallas import tpu as pltpu


def _layernorm(x, gamma, beta, eps):
    mu = jnp.mean(x, axis=-1, keepdims=True)
    var = jnp.mean((x - mu) ** 2, axis=-1, keepdims=True)
    return (x - mu) * jax.lax.rsqrt(var + eps) * gamma + beta


def _gelu_exact(x):
    # torch.nn.functional.gelu default = exact erf formulation (kept for spec fidelity;
    # tanh-approx would ride the EUP slot but changes numerics vs PyTorch).
    return 0.5 * x * (1.0 + jax.lax.erf(x * (1.0 / math.sqrt(2.0))))


def coattention_kernel(
    xkv_ref, xq_ref, mask_ref,
    wq_ref, bq_ref, wkv_ref, bkv_ref,
    wd_ref, bd_ref, g1_ref, be1_ref,
    wf_ref, bf_ref, wfo_ref, bfo_ref, g2_ref, be2_ref,
    out_ref,
    *, num_heads, head_size, eps):
    f32, bf16 = jnp.float32, jnp.bfloat16
    B, S_kv, H = xkv_ref.shape
    _, S_q, _ = xq_ref.shape
    NH, hd = num_heads, head_size
    G = B * NH
    tok_q, tok_kv = B * S_q, B * S_kv

    xq = xq_ref[...]                             # (B, S_q, H) f32 (residual path)
    xq_tok = xq.reshape(tok_q, H)                # leading-dim flatten only
    xkv_tok = xkv_ref[...].reshape(tok_kv, H)    # bf16 already

    # ---- lane-dense token-flattened projections (full-width MXU) ----------------
    q = jnp.dot(xq_tok.astype(bf16), wq_ref[...],
                preferred_element_type=f32) + bq_ref[...]          # (tok_q, H) f32
    kv = jnp.dot(xkv_tok, wkv_ref[...],
                 preferred_element_type=f32) + bkv_ref[...]        # (tok_kv, 2H) f32

    # fold 1/sqrt(hd) into q: one (tok,H) VPU pass instead of a (G,S_q,S_kv) pass
    q = q * (1.0 / math.sqrt(head_size))

    q16 = q.astype(bf16)
    k16 = kv[:, :H].astype(bf16)
    v16 = kv[:, H:].astype(bf16)

    # ---- split heads: static lane slices + leading-dim stack (g = b*NH + n) -----
    def split_heads(x2d, S):                     # (B*S, H) -> (G, S, hd)
        parts = [x2d[:, n * hd:(n + 1) * hd].reshape(B, S, hd) for n in range(NH)]
        return jnp.stack(parts, axis=1).reshape(G, S, hd)

    qh = split_heads(q16, S_q)                   # (G, S_q,  hd) bf16
    kh = split_heads(k16, S_kv)                  # (G, S_kv, hd) bf16
    vh = split_heads(v16, S_kv)                  # (G, S_kv, hd) bf16

    # ---- attention: leading-batch 3-D einsums, f32 accumulation ------------------
    scores = jnp.einsum('gqd,gkd->gqk', qh, kh,
                        preferred_element_type=f32)                # (G, S_q, S_kv)

    # extended mask bias kept at (G, 1, S_kv); implicit broadcast over q rows
    bias = (1.0 - mask_ref[...]) * -10000.0                        # (B, 1, S_kv)
    bias_g = jnp.broadcast_to(bias[:, None], (B, NH, 1, S_kv)).reshape(G, 1, S_kv)
    scores = scores + bias_g

    scores = scores - jnp.max(scores, axis=-1, keepdims=True)
    p = jnp.exp(scores)
    p = p * pl.reciprocal(jnp.sum(p, axis=-1, keepdims=True), approx=True)

    ctx = jnp.einsum('gqk,gkd->gqd', p.astype(bf16), vh,
                     preferred_element_type=f32)                   # (G, S_q, hd) f32

    # ---- merge heads to a lane-dense (tok, H) slab, single output projection -----
    ctx4 = ctx.reshape(B, NH, S_q, hd)
    ctx_tok = jnp.concatenate([ctx4[:, n] for n in range(NH)],
                              axis=-1).reshape(tok_q, H)           # lane order n*hd+d
    proj = jnp.dot(ctx_tok.astype(bf16), wd_ref[...],
                   preferred_element_type=f32) + bd_ref[...]       # (tok_q, H) f32

    # ---- residual + LayerNorm + FFN + LayerNorm on the token-flattened slab ------
    ln1 = _layernorm(xq_tok + proj, g1_ref[...], be1_ref[...], eps)

    f = jnp.dot(ln1.astype(bf16), wf_ref[...],
                preferred_element_type=f32) + bf_ref[...]
    f = _gelu_exact(f)
    fo = jnp.dot(f.astype(bf16), wfo_ref[...],
                 preferred_element_type=f32) + bfo_ref[...]

    out = _layernorm(fo + ln1, g2_ref[...], be2_ref[...], eps)
    out_ref[...] = out.reshape(B, S_q, H)


def coattention_forward(x_kv, x_q, attention_mask, params, *, num_heads, eps=1e-12):
    """x_kv = input_ids embeddings (B, S_kv, H), x_q = input_ids_1 embeddings
    (B, S_q, H), attention_mask (B, S_kv) in {0,1} (masks x_kv positions)."""
    f32, bf16 = jnp.float32, jnp.bfloat16
    B, S_kv, H = x_kv.shape
    _, S_q, _ = x_q.shape
    I = params["wf"].shape[1]
    NH = num_heads
    hd = H // NH

    # Wrapper-side layout/dtype plumbing (no math): bf16 matmul weights, fused K/V
    # weight (H, 2H), lane-dense (1, H) f32 biases, bf16 x_kv (only an MXU operand).
    wq16 = params["wq"].astype(bf16)
    wkv16 = jnp.concatenate([params["wk"], params["wv"]], axis=1).astype(bf16)
    bq = params["bq"].reshape(1, H).astype(f32)
    bkv = jnp.concatenate([params["bk"].reshape(1, H),
                           params["bv"].reshape(1, H)], axis=1).astype(f32)
    wd16 = params["wd"].astype(bf16)
    wf16 = params["wf"].astype(bf16)
    wfo16 = params["wfo"].astype(bf16)
    mask3 = attention_mask.astype(f32).reshape(B, 1, S_kv)
    xkv16 = x_kv.astype(bf16)

    operands = (
        xkv16, x_q, mask3,
        wq16, bq, wkv16, bkv,
        wd16, params["bd"].reshape(1, H).astype(f32),
        params["g1"].reshape(1, H).astype(f32), params["be1"].reshape(1, H).astype(f32),
        wf16, params["bf"].reshape(1, I).astype(f32),
        wfo16, params["bfo"].reshape(1, H).astype(f32),
        params["g2"].reshape(1, H).astype(f32), params["be2"].reshape(1, H).astype(f32),
    )

    kernel = functools.partial(coattention_kernel,
                               num_heads=NH, head_size=hd, eps=eps)

    # No grid: single invocation, every operand resident in VMEM exactly once
    # (no double-buffering of a 1-step pipeline).
    vmem_spec = pl.BlockSpec(memory_space=pltpu.MemorySpace.VMEM)

    # advisory cost hint so XLA schedules neighbouring ops around the custom call
    flops = 2 * B * (
        S_q * H * H + 2 * S_kv * H * H          # Q / fused K+V projections
        + 2 * NH * S_q * S_kv * hd              # scores + context
        + S_q * H * H                           # dense output projection
        + 2 * S_q * H * I)                      # FFN in / out
    transcendentals = B * (NH * S_q * S_kv + S_q * I)
    bytes_accessed = int(sum(o.size * o.dtype.itemsize for o in operands)
                         + B * S_q * H * 4)

    out = pl.pallas_call(
        kernel,
        out_shape=jax.ShapeDtypeStruct((B, S_q, H), f32),
        in_specs=[vmem_spec] * len(operands),
        out_specs=vmem_spec,
        compiler_params=pltpu.CompilerParams(vmem_limit_bytes=32 * 1024 * 1024),
        cost_estimate=pl.CostEstimate(
            flops=flops, transcendentals=transcendentals,
            bytes_accessed=bytes_accessed),
    )(*operands)
    return out


def coattention_reference(x_kv, x_q, attention_mask, params, *, num_heads, eps=1e-12):
    """Pure-JAX f32 reference mirroring the PyTorch forward (eval mode)."""
    B, S_kv, H = x_kv.shape
    _, S_q, _ = x_q.shape
    hd = H // num_heads

    def lin(x, w, b):
        return x @ w + b

    q = lin(x_q, params["wq"], params["bq"])
    k = lin(x_kv, params["wk"], params["bk"])
    v = lin(x_kv, params["wv"], params["bv"])

    def heads(x, s):
        return x.reshape(B, s, num_heads, hd).transpose(0, 2, 1, 3)

    qh, kh, vh = heads(q, S_q), heads(k, S_kv), heads(v, S_kv)
    scores = jnp.einsum("bhqd,bhkd->bhqk", qh, kh) / math.sqrt(hd)
    mask_bias = (1.0 - attention_mask.astype(jnp.float32))[:, None, None, :] * -10000.0
    scores = scores + mask_bias
    probs = jax.nn.softmax(scores, axis=-1)
    ctx = jnp.einsum("bhqk,bhkd->bhqd", probs, vh)
    ctx = ctx.transpose(0, 2, 1, 3).reshape(B, S_q, H)
    proj = lin(ctx, params["wd"], params["bd"])

    def ln(x, g, b):
        mu = jnp.mean(x, -1, keepdims=True)
        var = jnp.mean((x - mu) ** 2, -1, keepdims=True)
        return (x - mu) / jnp.sqrt(var + eps) * g + b

    ln1 = ln(x_q + proj, params["g1"], params["be1"])
    f = jax.nn.gelu(lin(ln1, params["wf"], params["bf"]), approximate=False)
    fo = lin(f, params["wfo"], params["bfo"])
    return ln(fo + ln1, params["g2"], params["be2"])


if __name__ == "__main__":
    # small config consistent with the module
    B, S, H, NH, I = 2, 8, 32, 4, 64
    key = jax.random.PRNGKey(0)
    ks = jax.random.split(key, 16)

    def w(k, shape, scale=0.05):
        return (scale * jax.random.normal(k, shape)).astype(jnp.float32)

    params = {
        "wq": w(ks[0], (H, H)), "bq": w(ks[1], (1, H)),
        "wk": w(ks[2], (H, H)), "bk": w(ks[3], (1, H)),
        "wv": w(ks[4], (H, H)), "bv": w(ks[5], (1, H)),
        "wd": w(ks[6], (H, H)), "bd": w(ks[7], (1, H)),
        "g1": jnp.ones((1, H), jnp.float32), "be1": jnp.zeros((1, H), jnp.float32),
        "wf": w(ks[8], (H, I)), "bf": w(ks[9], (1, I)),
        "wfo": w(ks[10], (I, H)), "bfo": w(ks[11], (1, H)),
        "g2": jnp.ones((1, H), jnp.float32), "be2": jnp.zeros((1, H), jnp.float32),
    }

    x_kv = jax.random.normal(ks[12], (B, S, H), jnp.float32)   # input_ids (embeddings)
    x_q = jax.random.normal(ks[13], (B, S, H), jnp.float32)    # input_ids_1 (embeddings)
    # mask: last 2 positions of batch 1 are padding
    attention_mask = jnp.ones((B, S), jnp.float32).at[1, -2:].set(0.0)

    out = coattention_forward(x_kv, x_q, attention_mask, params, num_heads=NH)
    out = jax.block_until_ready(out)

    ref = coattention_reference(x_kv, x_q, attention_mask, params, num_heads=NH)
    assert out.shape == (B, S, H)
    assert jnp.all(jnp.isfinite(out))
    # tolerance accounts for bf16 MXU operands + approx softmax reciprocal
    assert jnp.allclose(out, ref, atol=2e-2, rtol=2e-2), float(jnp.max(jnp.abs(out - ref)))

    print("KERNEL_OK")
</pallas_src>

<mosaic_0001>
module attributes {stable_mosaic.version = 11 : i64} {
  func.func @coattention_kernel(%arg0: memref<2x8x32xbf16, #tpu.memory_space<vmem>>, %arg1: memref<2x8x32xf32, #tpu.memory_space<vmem>>, %arg2: memref<2x1x8xf32, #tpu.memory_space<vmem>>, %arg3: memref<32x32xbf16, #tpu.memory_space<vmem>>, %arg4: memref<1x32xf32, #tpu.memory_space<vmem>>, %arg5: memref<32x64xbf16, #tpu.memory_space<vmem>>, %arg6: memref<1x64xf32, #tpu.memory_space<vmem>>, %arg7: memref<32x32xbf16, #tpu.memory_space<vmem>>, %arg8: memref<1x32xf32, #tpu.memory_space<vmem>>, %arg9: memref<1x32xf32, #tpu.memory_space<vmem>>, %arg10: memref<1x32xf32, #tpu.memory_space<vmem>>, %arg11: memref<32x64xbf16, #tpu.memory_space<vmem>>, %arg12: memref<1x64xf32, #tpu.memory_space<vmem>>, %arg13: memref<64x32xbf16, #tpu.memory_space<vmem>>, %arg14: memref<1x32xf32, #tpu.memory_space<vmem>>, %arg15: memref<1x32xf32, #tpu.memory_space<vmem>>, %arg16: memref<1x32xf32, #tpu.memory_space<vmem>>, %arg17: memref<2x8x32xf32, #tpu.memory_space<vmem>>) attributes {dimension_semantics = [], scalar_prefetch = 0 : i64, scratch_operands = 0 : i64, tpu.core_type = #tpu.core_type<tc>} {
    %c0 = arith.constant 0 : index
    %c0_0 = arith.constant 0 : index
    %c0_1 = arith.constant 0 : index
    %0 = vector.load %arg1[%c0, %c0_0, %c0_1] : memref<2x8x32xf32, #tpu.memory_space<vmem>>, vector<2x8x32xf32>
    %1 = vector.shape_cast %0 : vector<2x8x32xf32> to vector<16x32xf32>
    %c0_2 = arith.constant 0 : index
    %c0_3 = arith.constant 0 : index
    %c0_4 = arith.constant 0 : index
    %2 = vector.load %arg0[%c0_2, %c0_3, %c0_4] : memref<2x8x32xbf16, #tpu.memory_space<vmem>>, vector<2x8x32xbf16>
    %3 = vector.shape_cast %2 : vector<2x8x32xbf16> to vector<16x32xbf16>
    %4 = arith.truncf %1 : vector<16x32xf32> to vector<16x32xbf16>
    %c0_5 = arith.constant 0 : index
    %c0_6 = arith.constant 0 : index
    %5 = vector.load %arg3[%c0_5, %c0_6] : memref<32x32xbf16, #tpu.memory_space<vmem>>, vector<32x32xbf16>
    %cst = arith.constant dense<0.000000e+00> : vector<16x32xf32>
    %6 = tpu.matmul %4, %5, %cst {dimension_numbers = #tpu.dot_dimension_numbers<[1], [0], [0], [1], [0, 0, 1, 1], [], []>} : vector<16x32xbf16>, vector<32x32xbf16>, vector<16x32xf32> -> vector<16x32xf32>
    %c0_7 = arith.constant 0 : index
    %c0_8 = arith.constant 0 : index
    %7 = vector.load %arg4[%c0_7, %c0_8] : memref<1x32xf32, #tpu.memory_space<vmem>>, vector<1x32xf32>
    %8 = vector.broadcast %7 : vector<1x32xf32> to vector<16x32xf32>
    %9 = arith.addf %6, %8 : vector<16x32xf32>
    %c0_9 = arith.constant 0 : index
    %c0_10 = arith.constant 0 : index
    %10 = vector.load %arg5[%c0_9, %c0_10] : memref<32x64xbf16, #tpu.memory_space<vmem>>, vector<32x64xbf16>
    %cst_11 = arith.constant dense<0.000000e+00> : vector<16x64xf32>
    %11 = tpu.matmul %3, %10, %cst_11 {dimension_numbers = #tpu.dot_dimension_numbers<[1], [0], [0], [1], [0, 0, 1, 1], [], []>} : vector<16x32xbf16>, vector<32x64xbf16>, vector<16x64xf32> -> vector<16x64xf32>
    %c0_12 = arith.constant 0 : index
    %c0_13 = arith.constant 0 : index
    %12 = vector.load %arg6[%c0_12, %c0_13] : memref<1x64xf32, #tpu.memory_space<vmem>>, vector<1x64xf32>
    %13 = vector.broadcast %12 : vector<1x64xf32> to vector<16x64xf32>
    %14 = arith.addf %11, %13 : vector<16x64xf32>
    %cst_14 = arith.constant 0.353553385 : f32
    %15 = vector.broadcast %cst_14 : f32 to vector<16x32xf32>
    %16 = arith.mulf %9, %15 : vector<16x32xf32>
    %17 = arith.truncf %16 : vector<16x32xf32> to vector<16x32xbf16>
    %18 = vector.extract_strided_slice %14 {offsets = [0, 0], sizes = [16, 32], strides = [1, 1]} : vector<16x64xf32> to vector<16x32xf32>
    %19 = arith.truncf %18 : vector<16x32xf32> to vector<16x32xbf16>
    %20 = vector.extract_strided_slice %14 {offsets = [0, 32], sizes = [16, 32], strides = [1, 1]} : vector<16x64xf32> to vector<16x32xf32>
    %21 = arith.truncf %20 : vector<16x32xf32> to vector<16x32xbf16>
    %22 = vector.extract_strided_slice %17 {offsets = [0, 0], sizes = [16, 8], strides = [1, 1]} : vector<16x32xbf16> to vector<16x8xbf16>
    %23 = vector.shape_cast %22 : vector<16x8xbf16> to vector<2x8x8xbf16>
    %24 = vector.extract_strided_slice %17 {offsets = [0, 8], sizes = [16, 8], strides = [1, 1]} : vector<16x32xbf16> to vector<16x8xbf16>
    %25 = vector.shape_cast %24 : vector<16x8xbf16> to vector<2x8x8xbf16>
    %26 = vector.extract_strided_slice %17 {offsets = [0, 16], sizes = [16, 8], strides = [1, 1]} : vector<16x32xbf16> to vector<16x8xbf16>
    %27 = vector.shape_cast %26 : vector<16x8xbf16> to vector<2x8x8xbf16>
    %28 = vector.extract_strided_slice %17 {offsets = [0, 24], sizes = [16, 8], strides = [1, 1]} : vector<16x32xbf16> to vector<16x8xbf16>
    %29 = vector.shape_cast %28 : vector<16x8xbf16> to vector<2x8x8xbf16>
    %30 = vector.shape_cast %23 : vector<2x8x8xbf16> to vector<2x1x8x8xbf16>
    %31 = vector.shape_cast %25 : vector<2x8x8xbf16> to vector<2x1x8x8xbf16>
    %32 = vector.shape_cast %27 : vector<2x8x8xbf16> to vector<2x1x8x8xbf16>
    %33 = vector.shape_cast %29 : vector<2x8x8xbf16> to vector<2x1x8x8xbf16>
    %34 = tpu.concatenate %30, %31, %32, %33 in 1 : vector<2x1x8x8xbf16>, vector<2x1x8x8xbf16>, vector<2x1x8x8xbf16>, vector<2x1x8x8xbf16> -> vector<2x4x8x8xbf16>
    %35 = vector.shape_cast %34 : vector<2x4x8x8xbf16> to vector<8x8x8xbf16>
    %36 = vector.extract_strided_slice %19 {offsets = [0, 0], sizes = [16, 8], strides = [1, 1]} : vector<16x32xbf16> to vector<16x8xbf16>
    %37 = vector.shape_cast %36 : vector<16x8xbf16> to vector<2x8x8xbf16>
    %38 = vector.extract_strided_slice %19 {offsets = [0, 8], sizes = [16, 8], strides = [1, 1]} : vector<16x32xbf16> to vector<16x8xbf16>
    %39 = vector.shape_cast %38 : vector<16x8xbf16> to vector<2x8x8xbf16>
    %40 = vector.extract_strided_slice %19 {offsets = [0, 16], sizes = [16, 8], strides = [1, 1]} : vector<16x32xbf16> to vector<16x8xbf16>
    %41 = vector.shape_cast %40 : vector<16x8xbf16> to vector<2x8x8xbf16>
    %42 = vector.extract_strided_slice %19 {offsets = [0, 24], sizes = [16, 8], strides = [1, 1]} : vector<16x32xbf16> to vector<16x8xbf16>
    %43 = vector.shape_cast %42 : vector<16x8xbf16> to vector<2x8x8xbf16>
    %44 = vector.shape_cast %37 : vector<2x8x8xbf16> to vector<2x1x8x8xbf16>
    %45 = vector.shape_cast %39 : vector<2x8x8xbf16> to vector<2x1x8x8xbf16>
    %46 = vector.shape_cast %41 : vector<2x8x8xbf16> to vector<2x1x8x8xbf16>
    %47 = vector.shape_cast %43 : vector<2x8x8xbf16> to vector<2x1x8x8xbf16>
    %48 = tpu.concatenate %44, %45, %46, %47 in 1 : vector<2x1x8x8xbf16>, vector<2x1x8x8xbf16>, vector<2x1x8x8xbf16>, vector<2x1x8x8xbf16> -> vector<2x4x8x8xbf16>
    %49 = vector.shape_cast %48 : vector<2x4x8x8xbf16> to vector<8x8x8xbf16>
    %50 = vector.extract_strided_slice %21 {offsets = [0, 0], sizes = [16, 8], strides = [1, 1]} : vector<16x32xbf16> to vector<16x8xbf16>
    %51 = vector.shape_cast %50 : vector<16x8xbf16> to vector<2x8x8xbf16>
    %52 = vector.extract_strided_slice %21 {offsets = [0, 8], sizes = [16, 8], strides = [1, 1]} : vector<16x32xbf16> to vector<16x8xbf16>
    %53 = vector.shape_cast %52 : vector<16x8xbf16> to vector<2x8x8xbf16>
    %54 = vector.extract_strided_slice %21 {offsets = [0, 16], sizes = [16, 8], strides = [1, 1]} : vector<16x32xbf16> to vector<16x8xbf16>
    %55 = vector.shape_cast %54 : vector<16x8xbf16> to vector<2x8x8xbf16>
    %56 = vector.extract_strided_slice %21 {offsets = [0, 24], sizes = [16, 8], strides = [1, 1]} : vector<16x32xbf16> to vector<16x8xbf16>
    %57 = vector.shape_cast %56 : vector<16x8xbf16> to vector<2x8x8xbf16>
    %58 = vector.shape_cast %51 : vector<2x8x8xbf16> to vector<2x1x8x8xbf16>
    %59 = vector.shape_cast %53 : vector<2x8x8xbf16> to vector<2x1x8x8xbf16>
    %60 = vector.shape_cast %55 : vector<2x8x8xbf16> to vector<2x1x8x8xbf16>
    %61 = vector.shape_cast %57 : vector<2x8x8xbf16> to vector<2x1x8x8xbf16>
    %62 = tpu.concatenate %58, %59, %60, %61 in 1 : vector<2x1x8x8xbf16>, vector<2x1x8x8xbf16>, vector<2x1x8x8xbf16>, vector<2x1x8x8xbf16> -> vector<2x4x8x8xbf16>
    %63 = vector.shape_cast %62 : vector<2x4x8x8xbf16> to vector<8x8x8xbf16>
    "tpu.trace_start"() <{level = 10 : i32, message = "gqd,gkd->gqk"}> : () -> ()
    %cst_15 = arith.constant dense<0.000000e+00> : vector<8x8x8xf32>
    %64 = tpu.matmul %35, %49, %cst_15 {dimension_numbers = #tpu.dot_dimension_numbers<[2], [2], [1], [1], [0, 0, 0, 1, 1, 1], [0], [0]>} : vector<8x8x8xbf16>, vector<8x8x8xbf16>, vector<8x8x8xf32> -> vector<8x8x8xf32>
    "tpu.trace_stop"() : () -> ()
    %c0_16 = arith.constant 0 : index
    %c0_17 = arith.constant 0 : index
    %c0_18 = arith.constant 0 : index
    %65 = vector.load %arg2[%c0_16, %c0_17, %c0_18] : memref<2x1x8xf32, #tpu.memory_space<vmem>>, vector<2x1x8xf32>
    %cst_19 = arith.constant 1.000000e+00 : f32
    %66 = vector.broadcast %cst_19 : f32 to vector<2x1x8xf32>
    %67 = arith.subf %66, %65 : vector<2x1x8xf32>
    %cst_20 = arith.constant -1.000000e+04 : f32
    %68 = vector.broadcast %cst_20 : f32 to vector<2x1x8xf32>
    %69 = arith.mulf %67, %68 : vector<2x1x8xf32>
    %70 = vector.shape_cast %69 : vector<2x1x8xf32> to vector<2x1x1x8xf32>
    %71 = vector.shape_cast %70 : vector<2x1x1x8xf32> to vector<2x1x1x8xf32>
    %72 = vector.broadcast %71 : vector<2x1x1x8xf32> to vector<2x4x1x8xf32>
    %73 = vector.shape_cast %72 : vector<2x4x1x8xf32> to vector<8x1x8xf32>
    %74 = vector.broadcast %73 : vector<8x1x8xf32> to vector<8x8x8xf32>
    %75 = arith.addf %64, %74 : vector<8x8x8xf32>
    %cst_21 = arith.constant dense<0xFF800000> : vector<8x8xf32>
    %76 = vector.multi_reduction <maximumf>, %75, %cst_21 [2] : vector<8x8x8xf32> to vector<8x8xf32>
    %77 = vector.shape_cast %76 : vector<8x8xf32> to vector<8x8x1xf32>
    %78 = vector.broadcast %77 : vector<8x8x1xf32> to vector<8x8x8xf32>
    %79 = arith.subf %75, %78 : vector<8x8x8xf32>
    %80 = math.exp %79 : vector<8x8x8xf32>
    %cst_22 = arith.constant dense<0.000000e+00> : vector<8x8xf32>
    %81 = vector.multi_reduction <add>, %80, %cst_22 [2] : vector<8x8x8xf32> to vector<8x8xf32>
    %82 = vector.shape_cast %81 : vector<8x8xf32> to vector<8x8x1xf32>
    %83 = tpu.reciprocal %82 {approx = true} : vector<8x8x1xf32> -> vector<8x8x1xf32>
    %84 = vector.broadcast %83 : vector<8x8x1xf32> to vector<8x8x8xf32>
    %85 = arith.mulf %80, %84 : vector<8x8x8xf32>
    %86 = arith.truncf %85 : vector<8x8x8xf32> to vector<8x8x8xbf16>
    "tpu.trace_start"() <{level = 10 : i32, message = "gqk,gkd->gqd"}> : () -> ()
    %cst_23 = arith.constant dense<0.000000e+00> : vector<8x8x8xf32>
    %87 = tpu.matmul %86, %63, %cst_23 {dimension_numbers = #tpu.dot_dimension_numbers<[2], [1], [1], [2], [0, 0, 0, 1, 1, 2], [0], [0]>} : vector<8x8x8xbf16>, vector<8x8x8xbf16>, vector<8x8x8xf32> -> vector<8x8x8xf32>
    "tpu.trace_stop"() : () -> ()
    %88 = vector.shape_cast %87 : vector<8x8x8xf32> to vector<2x4x8x8xf32>
    %89 = vector.extract_strided_slice %88 {offsets = [0, 0, 0, 0], sizes = [2, 1, 8, 8], strides = [1, 1, 1, 1]} : vector<2x4x8x8xf32> to vector<2x1x8x8xf32>
    %90 = vector.shape_cast %89 : vector<2x1x8x8xf32> to vector<2x8x8xf32>
    %91 = vector.extract_strided_slice %88 {offsets = [0, 1, 0, 0], sizes = [2, 1, 8, 8], strides = [1, 1, 1, 1]} : vector<2x4x8x8xf32> to vector<2x1x8x8xf32>
    %92 = vector.shape_cast %91 : vector<2x1x8x8xf32> to vector<2x8x8xf32>
    %93 = vector.extract_strided_slice %88 {offsets = [0, 2, 0, 0], sizes = [2, 1, 8, 8], strides = [1, 1, 1, 1]} : vector<2x4x8x8xf32> to vector<2x1x8x8xf32>
    %94 = vector.shape_cast %93 : vector<2x1x8x8xf32> to vector<2x8x8xf32>
    %95 = vector.extract_strided_slice %88 {offsets = [0, 3, 0, 0], sizes = [2, 1, 8, 8], strides = [1, 1, 1, 1]} : vector<2x4x8x8xf32> to vector<2x1x8x8xf32>
    %96 = vector.shape_cast %95 : vector<2x1x8x8xf32> to vector<2x8x8xf32>
    %97 = tpu.concatenate %90, %92, %94, %96 in 2 : vector<2x8x8xf32>, vector<2x8x8xf32>, vector<2x8x8xf32>, vector<2x8x8xf32> -> vector<2x8x32xf32>
    %98 = vector.shape_cast %97 : vector<2x8x32xf32> to vector<16x32xf32>
    %99 = arith.truncf %98 : vector<16x32xf32> to vector<16x32xbf16>
    %c0_24 = arith.constant 0 : index
    %c0_25 = arith.constant 0 : index
    %100 = vector.load %arg7[%c0_24, %c0_25] : memref<32x32xbf16, #tpu.memory_space<vmem>>, vector<32x32xbf16>
    %cst_26 = arith.constant dense<0.000000e+00> : vector<16x32xf32>
    %101 = tpu.matmul %99, %100, %cst_26 {dimension_numbers = #tpu.dot_dimension_numbers<[1], [0], [0], [1], [0, 0, 1, 1], [], []>} : vector<16x32xbf16>, vector<32x32xbf16>, vector<16x32xf32> -> vector<16x32xf32>
    %c0_27 = arith.constant 0 : index
    %c0_28 = arith.constant 0 : index
    %102 = vector.load %arg8[%c0_27, %c0_28] : memref<1x32xf32, #tpu.memory_space<vmem>>, vector<1x32xf32>
    %103 = vector.broadcast %102 : vector<1x32xf32> to vector<16x32xf32>
    %104 = arith.addf %101, %103 : vector<16x32xf32>
    %105 = arith.addf %1, %104 : vector<16x32xf32>
    %c0_29 = arith.constant 0 : index
    %c0_30 = arith.constant 0 : index
    %106 = vector.load %arg9[%c0_29, %c0_30] : memref<1x32xf32, #tpu.memory_space<vmem>>, vector<1x32xf32>
    %c0_31 = arith.constant 0 : index
    %c0_32 = arith.constant 0 : index
    %107 = vector.load %arg10[%c0_31, %c0_32] : memref<1x32xf32, #tpu.memory_space<vmem>>, vector<1x32xf32>
    %cst_33 = arith.constant dense<0.000000e+00> : vector<16xf32>
    %108 = vector.multi_reduction <add>, %105, %cst_33 [1] : vector<16x32xf32> to vector<16xf32>
    %109 = vector.shape_cast %108 : vector<16xf32> to vector<16x1xf32>
    %cst_34 = arith.constant 3.200000e+01 : f32
    %110 = vector.broadcast %cst_34 : f32 to vector<16x1xf32>
    %111 = arith.divf %109, %110 : vector<16x1xf32>
    %112 = vector.broadcast %111 : vector<16x1xf32> to vector<16x32xf32>
    %113 = arith.subf %105, %112 : vector<16x32xf32>
    %114 = arith.mulf %113, %113 : vector<16x32xf32>
    %cst_35 = arith.constant dense<0.000000e+00> : vector<16xf32>
    %115 = vector.multi_reduction <add>, %114, %cst_35 [1] : vector<16x32xf32> to vector<16xf32>
    %116 = vector.shape_cast %115 : vector<16xf32> to vector<16x1xf32>
    %cst_36 = arith.constant 3.200000e+01 : f32
    %117 = vector.broadcast %cst_36 : f32 to vector<16x1xf32>
    %118 = arith.divf %116, %117 : vector<16x1xf32>
    %119 = vector.broadcast %111 : vector<16x1xf32> to vector<16x32xf32>
    %120 = arith.subf %105, %119 : vector<16x32xf32>
    %cst_37 = arith.constant 9.99999996E-13 : f32
    %121 = vector.broadcast %cst_37 : f32 to vector<16x1xf32>
    %122 = arith.addf %118, %121 : vector<16x1xf32>
    %123 = math.rsqrt %122 : vector<16x1xf32>
    %124 = vector.broadcast %123 : vector<16x1xf32> to vector<16x32xf32>
    %125 = arith.mulf %120, %124 : vector<16x32xf32>
    %126 = vector.broadcast %106 : vector<1x32xf32> to vector<16x32xf32>
    %127 = arith.mulf %125, %126 : vector<16x32xf32>
    %128 = vector.broadcast %107 : vector<1x32xf32> to vector<16x32xf32>
    %129 = arith.addf %127, %128 : vector<16x32xf32>
    %130 = arith.truncf %129 : vector<16x32xf32> to vector<16x32xbf16>
    %c0_38 = arith.constant 0 : index
    %c0_39 = arith.constant 0 : index
    %131 = vector.load %arg11[%c0_38, %c0_39] : memref<32x64xbf16, #tpu.memory_space<vmem>>, vector<32x64xbf16>
    %cst_40 = arith.constant dense<0.000000e+00> : vector<16x64xf32>
    %132 = tpu.matmul %130, %131, %cst_40 {dimension_numbers = #tpu.dot_dimension_numbers<[1], [0], [0], [1], [0, 0, 1, 1], [], []>} : vector<16x32xbf16>, vector<32x64xbf16>, vector<16x64xf32> -> vector<16x64xf32>
    %c0_41 = arith.constant 0 : index
    %c0_42 = arith.constant 0 : index
    %133 = vector.load %arg12[%c0_41, %c0_42] : memref<1x64xf32, #tpu.memory_space<vmem>>, vector<1x64xf32>
    %134 = vector.broadcast %133 : vector<1x64xf32> to vector<16x64xf32>
    %135 = arith.addf %132, %134 : vector<16x64xf32>
    %cst_43 = arith.constant 5.000000e-01 : f32
    %136 = vector.broadcast %cst_43 : f32 to vector<16x64xf32>
    %137 = arith.mulf %136, %135 : vector<16x64xf32>
    %cst_44 = arith.constant 0.707106769 : f32
    %138 = vector.broadcast %cst_44 : f32 to vector<16x64xf32>
    %139 = arith.mulf %135, %138 : vector<16x64xf32>
    %140 = math.erf %139 : vector<16x64xf32>
    %cst_45 = arith.constant 1.000000e+00 : f32
    %141 = vector.broadcast %cst_45 : f32 to vector<16x64xf32>
    %142 = arith.addf %141, %140 : vector<16x64xf32>
    %143 = arith.mulf %137, %142 : vector<16x64xf32>
    %144 = arith.truncf %143 : vector<16x64xf32> to vector<16x64xbf16>
    %c0_46 = arith.constant 0 : index
    %c0_47 = arith.constant 0 : index
    %145 = vector.load %arg13[%c0_46, %c0_47] : memref<64x32xbf16, #tpu.memory_space<vmem>>, vector<64x32xbf16>
    %cst_48 = arith.constant dense<0.000000e+00> : vector<16x32xf32>
    %146 = tpu.matmul %144, %145, %cst_48 {dimension_numbers = #tpu.dot_dimension_numbers<[1], [0], [0], [1], [0, 0, 1, 1], [], []>} : vector<16x64xbf16>, vector<64x32xbf16>, vector<16x32xf32> -> vector<16x32xf32>
    %c0_49 = arith.constant 0 : index
    %c0_50 = arith.constant 0 : index
    %147 = vector.load %arg14[%c0_49, %c0_50] : memref<1x32xf32, #tpu.memory_space<vmem>>, vector<1x32xf32>
    %148 = vector.broadcast %147 : vector<1x32xf32> to vector<16x32xf32>
    %149 = arith.addf %146, %148 : vector<16x32xf32>
    %150 = arith.addf %149, %129 : vector<16x32xf32>
    %c0_51 = arith.constant 0 : index
    %c0_52 = arith.constant 0 : index
    %151 = vector.load %arg15[%c0_51, %c0_52] : memref<1x32xf32, #tpu.memory_space<vmem>>, vector<1x32xf32>
    %c0_53 = arith.constant 0 : index
    %c0_54 = arith.constant 0 : index
    %152 = vector.load %arg16[%c0_53, %c0_54] : memref<1x32xf32, #tpu.memory_space<vmem>>, vector<1x32xf32>
    %cst_55 = arith.constant dense<0.000000e+00> : vector<16xf32>
    %153 = vector.multi_reduction <add>, %150, %cst_55 [1] : vector<16x32xf32> to vector<16xf32>
    %154 = vector.shape_cast %153 : vector<16xf32> to vector<16x1xf32>
    %cst_56 = arith.constant 3.200000e+01 : f32
    %155 = vector.broadcast %cst_56 : f32 to vector<16x1xf32>
    %156 = arith.divf %154, %155 : vector<16x1xf32>
    %157 = vector.broadcast %156 : vector<16x1xf32> to vector<16x32xf32>
    %158 = arith.subf %150, %157 : vector<16x32xf32>
    %159 = arith.mulf %158, %158 : vector<16x32xf32>
    %cst_57 = arith.constant dense<0.000000e+00> : vector<16xf32>
    %160 = vector.multi_reduction <add>, %159, %cst_57 [1] : vector<16x32xf32> to vector<16xf32>
    %161 = vector.shape_cast %160 : vector<16xf32> to vector<16x1xf32>
    %cst_58 = arith.constant 3.200000e+01 : f32
    %162 = vector.broadcast %cst_58 : f32 to vector<16x1xf32>
    %163 = arith.divf %161, %162 : vector<16x1xf32>
    %164 = vector.broadcast %156 : vector<16x1xf32> to vector<16x32xf32>
    %165 = arith.subf %150, %164 : vector<16x32xf32>
    %cst_59 = arith.constant 9.99999996E-13 : f32
    %166 = vector.broadcast %cst_59 : f32 to vector<16x1xf32>
    %167 = arith.addf %163, %166 : vector<16x1xf32>
    %168 = math.rsqrt %167 : vector<16x1xf32>
    %169 = vector.broadcast %168 : vector<16x1xf32> to vector<16x32xf32>
    %170 = arith.mulf %165, %169 : vector<16x32xf32>
    %171 = vector.broadcast %151 : vector<1x32xf32> to vector<16x32xf32>
    %172 = arith.mulf %170, %171 : vector<16x32xf32>
    %173 = vector.broadcast %152 : vector<1x32xf32> to vector<16x32xf32>
    %174 = arith.addf %172, %173 : vector<16x32xf32>
    %175 = vector.shape_cast %174 : vector<16x32xf32> to vector<2x8x32xf32>
    %c0_60 = arith.constant 0 : index
    %c0_61 = arith.constant 0 : index
    %c0_62 = arith.constant 0 : index
    %176 = vector.load %arg17[%c0_60, %c0_61, %c0_62] : memref<2x8x32xf32, #tpu.memory_space<vmem>>, vector<2x8x32xf32>
    tpu.vector_store %arg17[%c0_60, %c0_61, %c0_62], %175 {strides = array<i32>} : memref<2x8x32xf32, #tpu.memory_space<vmem>>, vector<2x8x32xf32>,
    return
  }
}

</mosaic_0001>

<bundles_post_ra>
// kernel: tpu_custom_call.1
= control target key start
LH: loop header
LB: loop body
LE: loop exit
PB: predicated region body
PF: predicated region fallthrough
CT: control target
= control target key end

     0   :  { %s2565_s0 = inlined_call_operand.hbm [shape: bf16[2,8,32], index: 0, kind: input, shape index: {}]   ;;  %s2566_s1 = inlined_call_operand.vmem [shape: f32[2,8,32], index: 1, kind: input, shape index: {}]   ;;  %s2567_s2 = inlined_call_operand.vmem [shape: f32[2,1,8], index: 2, kind: input, shape index: {}]   ;;  %s2568_s3 = inlined_call_operand.vmem [shape: bf16[32,32], index: 3, kind: input, shape index: {}]   ;;  %s2569_s4 = inlined_call_operand.hbm [shape: f32[1,32], index: 4, kind: input, shape index: {}]   ;;  %s2570_s5 = inlined_call_operand.vmem [shape: bf16[32,64], index: 5, kind: input, shape index: {}]   ;;  %s2571_s6 = inlined_call_operand.hbm [shape: f32[1,64], index: 6, kind: input, shape index: {}]   ;;  %s2572_s7 = inlined_call_operand.hbm [shape: bf16[32,32], index: 7, kind: input, shape index: {}]   ;;  %s2573_s8 = inlined_call_operand.hbm [shape: f32[1,32], index: 8, kind: input, shape index: {}]   ;;  %s2574_s9 = inlined_call_operand.hbm [shape: f32[1,32], index: 9, kind: input, shape index: {}]   ;;  %s2575_s10 = inlined_call_operand.vmem [shape: f32[1,32], index: 10, kind: input, shape index: {}]   ;;  %s2576_s11 = inlined_call_operand.vmem [shape: bf16[32,64], index: 11, kind: input, shape index: {}]   ;;  %s2577_s12 = inlined_call_operand.vmem [shape: f32[1,64], index: 12, kind: input, shape index: {}]   ;;  %s2578_s13 = inlined_call_operand.vmem [shape: bf16[64,32], index: 13, kind: input, shape index: {}]   ;;  %s2579_s14 = inlined_call_operand.vmem [shape: f32[1,32], index: 14, kind: input, shape index: {}]   ;;  %s2580_s15 = inlined_call_operand.vmem [shape: f32[1,32], index: 15, kind: input, shape index: {}]   ;;  %s2581_s16 = inlined_call_operand.vmem [shape: f32[1,32], index: 16, kind: input, shape index: {}]   ;;  %s2582_s17 = inlined_call_operand.hbm [shape: f32[2,8,32], index: 17, kind: output, shape index: {}]  }
   0x1   :  { %2585 = sst [smem:[#allocation19_spill]] %s2565_s0 }
   0x2   :  { %2586 = sst [smem:[#allocation20_spill]] %s2566_s1 }
   0x3   :  { %22 = vsyncpa [#allocation3], 0 }
   0x4   :  { %23 = vsyncpa [#allocation6], 0 }
   0x5   :  { %24 = vsyncpa [#allocation9], 0 }
   0x6   :  { %25 = vsyncpa [#allocation12], 0 }
   0x7   :  { %26 = vsyncpa [#allocation4], 0  ;;  %s2074_s24 = smov [#allocation5]   ;;  %s1910_s28 = scalar_lea.hbm %s2569_s4, 16 }
   0x8   :  { %s51_s25 = sshll.u32 %s2074_s24, 4  ;;  %p1911_p0 = scmp.ne.s32.totalorder %s2569_s4, %s1910_s28  ;;  %s52_s25 = int_to_ptr.vmem [resolvable:$true] %s51_s25 }
   0x9   :  { %p1914_p1 = scmp.lt.u32.totalorder %s1910_s28, %s2569_s4 }
   0xb   :  { %p1916_p2 = pnand %p1914_p1, %p1911_p0 }
   0xd   :  { %1919 = shalt.err (!%p1916_p2)
}
   0xe   :  { %s1920_s19 = scalar_lea.vmem %s52_s25, 16  ;;  %s1924_s1 = scalar_lea.vmem %s52_s25, 32 }
   0xf   :  { %p1921_p3 = scmp.ne.s32.totalorder %s52_s25, %s1920_s19  ;;  %p1925_p4 = scmp.lt.s32.totalorder %s52_s25, %s52_s25 }
  0x10   :  { %p1926_p5 = scmp.lt.s32.totalorder %s1924_s1, %s1920_s19 }
  0x12   :  { %p1927_p6 = por %p1926_p5, %p1925_p4 }
  0x14   :  { %p1928_p7 = pnand %p1927_p6, %p1921_p3 }
  0x16   :  { %1931 = shalt.err (!%p1928_p7)
}
  0x17   :  { %54 = dma.hbm_to_vmem [thread:$0]  %s2569_s4, 16, %s52_s25, [#allocation6]  }
  0x18   :  { %s2075_s22 = smov [#allocation8]   ;;  %s2076_s24 = smov [#allocation2]  }
  0x19   :  { %s72_s23 = sshll.u32 %s2075_s22, 4  ;;  %s32_s26 = sshll.u32 %s2076_s24, 4  ;;  %s73_s23 = int_to_ptr.vmem [resolvable:$true] %s72_s23  ;;  %s33_s26 = int_to_ptr.vmem [resolvable:$true] %s32_s26 }
  0x1a   :  { %s1932_s29 = scalar_lea.hbm %s2572_s7, 256 }
  0x1b   :  { %p1933_p8 = scmp.ne.s32.totalorder %s2572_s7, %s1932_s29  ;;  %p1936_p9 = scmp.lt.u32.totalorder %s1932_s29, %s2572_s7 }
  0x1d   :  { %p1938_p10 = pnand %p1936_p9, %p1933_p8 }
  0x1f   :  { %1941 = shalt.err (!%p1938_p10)
}
  0x20   :  { %s1942_s4 = scalar_lea.vmem %s73_s23, 256  ;;  %p1947_p12 = scmp.lt.s32.totalorder %s73_s23, %s73_s23 }
  0x21   :  { %p1943_p11 = scmp.ne.s32.totalorder %s73_s23, %s1942_s4  ;;  %p1948_p13 = scmp.lt.s32.totalorder %s1942_s4, %s1942_s4 }
  0x23   :  { %p1949_p0 = por %p1948_p13, %p1947_p12 }
  0x25   :  { %p1950_p1 = pnand %p1949_p0, %p1943_p11 }
  0x27   :  { %1953 = shalt.err (!%p1950_p1)
}
  0x28   :  { %s2077_s25 = smov 64   ;;  %s2078_s1 = smov 4  }
  0x29   :  { %78 = dma.hbm_to_vmem [thread:$0]  %s2572_s7, 256, %s73_s23, [#allocation9], %s2077_s25, %s2077_s25, %s2078_s1  }
  0x2a   :  { %s2587_s27 = sld [smem:[#allocation19_spill]] }
  0x30   :  { %s1954_s28 = scalar_lea.hbm %s2587_s27, 128 }
  0x31   :  { %p1955_p2 = scmp.ne.s32.totalorder %s2587_s27, %s1954_s28  ;;  %p1958_p3 = scmp.lt.u32.totalorder %s1954_s28, %s2587_s27 }
  0x33   :  { %p1960_p4 = pnand %p1958_p3, %p1955_p2 }
  0x35   :  { %1963 = shalt.err (!%p1960_p4)
}
  0x36   :  { %s1964_s19 = scalar_lea.vmem %s33_s26, 128  ;;  %p1969_p6 = scmp.lt.s32.totalorder %s33_s26, %s33_s26 }
  0x37   :  { %p1965_p5 = scmp.ne.s32.totalorder %s33_s26, %s1964_s19  ;;  %p1970_p7 = scmp.lt.s32.totalorder %s1964_s19, %s1964_s19 }
  0x39   :  { %p1971_p8 = por %p1970_p7, %p1969_p6 }
  0x3b   :  { %p1972_p9 = pnand %p1971_p8, %p1965_p5 }
  0x3d   :  { %1975 = shalt.err (!%p1972_p9)
}
  0x3e   :  { %38 = dma.hbm_to_vmem [thread:$0]  %s2587_s27, 128, %s33_s26, [#allocation3], %s2077_s25, %s2077_s25, %s2078_s1  }
  0x3f   :  { %s2079_s4 = smov [#allocation7]   ;;  %s2080_s21 = smov [#allocation10]  }
  0x40   :  { %s63_s20 = sshll.u32 %s2079_s4, 4  ;;  %s85_s22 = sshll.u32 %s2080_s21, 4  ;;  %s64_s20 = int_to_ptr.vmem [resolvable:$true] %s63_s20  ;;  %s86_s22 = int_to_ptr.vmem [resolvable:$true] %s85_s22 }
  0x41   :  { %s1976_s29 = scalar_lea.hbm %s2571_s6, 16 }
  0x42   :  { %p1977_p10 = scmp.ne.s32.totalorder %s2571_s6, %s1976_s29  ;;  %p1980_p11 = scmp.lt.u32.totalorder %s1976_s29, %s2571_s6 }
  0x44   :  { %p1982_p12 = pnand %p1980_p11, %p1977_p10 }
  0x46   :  { %1985 = shalt.err (!%p1982_p12)
}
  0x47   :  { %s1986_s26 = scalar_lea.vmem %s64_s20, 16  ;;  %s1990_s25 = scalar_lea.vmem %s64_s20, 32 }
  0x48   :  { %p1987_p13 = scmp.ne.s32.totalorder %s64_s20, %s1986_s26  ;;  %p1991_p0 = scmp.lt.s32.totalorder %s64_s20, %s64_s20 }
  0x49   :  { %p1992_p1 = scmp.lt.s32.totalorder %s1990_s25, %s1986_s26 }
  0x4b   :  { %p1993_p2 = por %p1992_p1, %p1991_p0 }
  0x4d   :  { %p1994_p3 = pnand %p1993_p2, %p1987_p13 }
  0x4f   :  { %1997 = shalt.err (!%p1994_p3)
}
  0x50   :  { %66 = dma.hbm_to_vmem [thread:$0]  %s2571_s6, 16, %s64_s20, [#allocation6]  }
  0x51   :  { %s1998_s4 = scalar_lea.hbm %s2573_s8, 16 }
  0x52   :  { %p1999_p4 = scmp.ne.s32.totalorder %s2573_s8, %s1998_s4  ;;  %p2002_p5 = scmp.lt.u32.totalorder %s1998_s4, %s2573_s8 }
  0x54   :  { %p2004_p6 = pnand %p2002_p5, %p1999_p4 }
  0x56   :  { %2007 = shalt.err (!%p2004_p6)
}
  0x57   :  { %s2008_s0 = scalar_lea.vmem %s86_s22, 16  ;;  %s2012_s30 = scalar_lea.vmem %s86_s22, 32 }
  0x58   :  { %p2009_p7 = scmp.ne.s32.totalorder %s86_s22, %s2008_s0  ;;  %p2013_p8 = scmp.lt.s32.totalorder %s86_s22, %s86_s22 }
  0x59   :  { %p2014_p9 = scmp.lt.s32.totalorder %s2012_s30, %s2008_s0 }
  0x5b   :  { %p2015_p10 = por %p2014_p9, %p2013_p8 }
  0x5d   :  { %p2016_p11 = pnand %p2015_p10, %p2009_p7 }
  0x5f   :  { %2019 = shalt.err (!%p2016_p11)
}
  0x60   :  { %88 = dma.hbm_to_vmem [thread:$0]  %s2573_s8, 16, %s86_s22, [#allocation9]  }
  0x61   :  { %s2081_s18 = smov [#allocation11]   ;;  %s2020_s1 = scalar_lea.hbm %s2574_s9, 16 }
  0x62   :  { %s95_s19 = sshll.u32 %s2081_s18, 4  ;;  %p2021_p12 = scmp.ne.s32.totalorder %s2574_s9, %s2020_s1  ;;  %s96_s19 = int_to_ptr.vmem [resolvable:$true] %s95_s19 }
  0x63   :  { %p2024_p13 = scmp.lt.u32.totalorder %s2020_s1, %s2574_s9 }
  0x65   :  { %p2026_p0 = pnand %p2024_p13, %p2021_p12 }
  0x67   :  { %2029 = shalt.err (!%p2026_p0)
}
  0x68   :  { %s2030_s21 = scalar_lea.vmem %s96_s19, 16  ;;  %s2034_s8 = scalar_lea.vmem %s96_s19, 32 }
  0x69   :  { %p2031_p1 = scmp.ne.s32.totalorder %s96_s19, %s2030_s21  ;;  %p2035_p2 = scmp.lt.s32.totalorder %s96_s19, %s96_s19 }
  0x6a   :  { %p2036_p3 = scmp.lt.s32.totalorder %s2034_s8, %s2030_s21 }
  0x6c   :  { %p2037_p4 = por %p2036_p3, %p2035_p2 }
  0x6e   :  { %p2038_p5 = pnand %p2037_p4, %p2031_p1 }
  0x70   :  { %2041 = shalt.err (!%p2038_p5)
}
  0x71   :  { %98 = dma.hbm_to_vmem [thread:$0]  %s2574_s9, 16, %s96_s19, [#allocation12]  }
  0x72   :  { %2064 = dma.done.wait [#allocation3], 128  }
  0x73   :  { %2065 = vsyncadd [#allocation3], 4294967168 }
  0x74   :  { %2066 = dma.done.wait [#allocation6], 32  }
  0x75   :  { %2067 = vsyncadd [#allocation6], 4294967264 }
  0x76   :  { %2068 = dma.done.wait [#allocation9], 272  }
  0x77   :  { %2069 = vsyncadd [#allocation9], 4294967024 }
  0x78   :  { %2070 = dma.done.wait [#allocation12], 16  }
  0x79   :  { %2071 = vsyncadd [#allocation12], 4294967280  ;;  %v2082_v0 = vmov 0.0   ;;  %vm2083_vm0 = vmmov 0   ;;  %v1853_v1 = vld [vmem:[%s2568_s3] sm:$0xff]   ;;  %v1854_v2 = vld [vmem:[%s2568_s3 + $0x8] sm:$0xff]   ;;  %v323_v51 = vlaneseq }
  0x7a   :  { %1679 = vmatprep.subr.bf16.mxu1 %v2082_v0  ;;  %1683 = vmatprep.mubr.msk.bf16.mxu1 %vm2083_vm0, %v2082_v0  ;;  %s2588_s20 = sld [smem:[#allocation20_spill]]  ;;  %vm160_vm1 = vcmask 261120   ;;  %v1855_v6 = vld [vmem:[%s2570_s5] sm:$0xff]   ;;  %v1856_v7 = vld [vmem:[%s2570_s5 + $0x8] sm:$0xff]   ;;  %s2084_s5 = smov 120   ;;  %vm333_vm2 = vcmask 64512  }
  0x7b   :  { %1695 = vmatprep.subr.bf16.mxu0 %v2082_v0  ;;  %1697 = vmatprep.mubr.msk.bf16.mxu0 %vm2083_vm0, %v2082_v0  ;;  %v1857_v8 = vld [vmem:[#allocation2] sm:$0xff]   ;;  %v1573_v9 = vld [vmem:[#allocation5] ss:$0 sm:$0xff]  ;;  %v1577_v17 = vld [vmem:[#allocation7] ss:$0 sm:$0xff]  ;;  %s2085_s27 = smov 104  }
  0x7c   :  { %1680 = vmatpush3.bf16.msra.mxu1 %v1853_v1  ;;  %s2086_s7 = smov 112   ;;  %s2087_s23 = smov 96   ;;  %vm803_vm3 = vcmask 1043456   ;;  %v315_v52 = vld [vmem:[%s2567_s2] sm:$0x1]  ;;  %v324_v54 = vshrl.u32 %v323_v51, 7 }
  0x7d   :  { %1681 = vmatprep.subr.bf16.mxu1 %v2082_v0  ;;  %v317_v53 = vsub.f32 1.0, %v315_v52  ;;  %v316_v1 = vld [vmem:[%s2567_s2 + $0x1] sm:$0x1]  ;;  %s2088_s2 = smov 8   ;;  %s2089_s24 = smov 16   ;;  %vm1221_vm4 = vcmask 130048  }
  0x7e   :  { %v325_v56 = vsub.s32 0, %v324_v54  ;;  %s2090_s9 = smov 24   ;;  %vm1224_vm5 = vcmask 195584   ;;  %vm1460_vm6 = vcmask 523264   ;;  %s2091_s21 = smov [#allocation13]  }
  0x7f   :  { %v319_v55 = vmul.f32 -10000.0, %v317_v53  ;;  %s1558_s8 = sshll.u32 %s2091_s21, 4  ;;  %s1559_s8 = int_to_ptr.vmem [resolvable:$true] %s1558_s8 }
  0x80   :  { %v2270_v3 = vld [vmem:[%s2588_s20] sm:$0xff]  ;;  %v2275_v4 = vld [vmem:[%s2588_s20 + $0x8] sm:$0xff]  ;;  %1682 = vmatpush3.bf16.msra.mxu1 %v1854_v2  ;;  %s2042_s22 = scalar_lea.vmem %s1559_s8, 256  ;;  %p2047_p7 = scmp.lt.s32.totalorder %s1559_s8, %s1559_s8 }
  0x81   :  { %v136_v5 = vpack.c.bf16 %v2275_v4, %v2270_v3  ;;  %1687 = vmatprep.subr.bf16.mxu1 %v2082_v0  ;;  %v326_v57 = vrot.slane %v319_v55, %v325_v56  ;;  %p2043_p6 = scmp.ne.s32.totalorder %s1559_s8, %s2042_s22  ;;  %p2048_p8 = scmp.lt.s32.totalorder %s2042_s22, %s2042_s22 }
  0x83   :  { %1684 = vmatmul.mubr.msk.bf16.vlgmr.msra.gmra.mrb[0].mxu1 %vm160_vm1, %v136_v5  ;;  %p2049_p9 = por %p2048_p8, %p2047_p7 }
  0x84   :  { %1688 = vmatpush3.bf16.msra.mxu1 %v1855_v6  ;;  %1691 = vmatprep.mubr.msk.bf16.mxu1 %vm2083_vm0, %v2082_v0 }
  0x85   :  { %1689 = vmatprep.subr.bf16.mxu1 %v2082_v0  ;;  %p2050_p10 = pnand %p2049_p9, %p2043_p6 }
  0x88   :  { %1690 = vmatpush3.bf16.msra.mxu1 %v1856_v7  ;;  %v318_v7 = vsub.f32 1.0, %v316_v1 }
  0x89   :  { %1701 = vmatprep.subr.bf16.mxu1 %v2082_v0 }
  0x8b   :  { %1692 = vmatmul.mubr.msk.bf16.vlgmr.msra.gmra.mrb[4].mxu1 %vm160_vm1, %v1857_v8 }
  0x8c   :  { %1703 = vmatprep.mubr.msk.bf16.mxu1 %vm2083_vm0, %v2082_v0 }
 0x156   :  { %v198_v10 = vpop.f32.mrb[0].mxu1 }
 0x157   :  { %v199_v11 = vadd.f32 %v1573_v9, %v198_v10  ;;  %v1685_v12 = vpop.f32.mrb[1].mxu1 }
 0x158   :  { %v201_v13 = vpop.f32.mrb[2].mxu1 }
 0x159   :  { %v277_v14 = vmul.f32 0.35355338, %v199_v11  ;;  %v1686_v15 = vpop.f32.mrb[3].mxu1  ;;  %v202_v26 = vadd.f32 %v1573_v9, %v201_v13 }
 0x15b   :  { %v1626_v16 = vpack.c.bf16 %v277_v14, %v277_v14  ;;  %v278_v28 = vmul.f32 0.35355338, %v202_v26  ;;  %v320_v14 = vmul.f32 -10000.0, %v318_v7 }
 0x15d   :  { %286 = vrot.lane.b32.xlu1 %v1626_v16, %s2084_s5  ;;  %v1627_v29 = vpack.c.bf16 %v278_v28, %v278_v28 }
 0x15e   :  { %v270_v18 = vpop.f32.mrb[4].mxu1 }
 0x15f   :  { %v271_v19 = vadd.f32 %v1577_v17, %v270_v18  ;;  %v1693_v20 = vpop.f32.mrb[5].mxu1 }
 0x160   :  { %v273_v21 = vpop.f32.mrb[6].mxu1 }
 0x161   :  { %v1628_v22 = vpack.c.bf16 %v271_v19, %v271_v19  ;;  %v1694_v23 = vpop.f32.mrb[7].mxu1  ;;  %v274_v25 = vadd.f32 %v1577_v17, %v273_v21  ;;  %v330_v21 = vrot.slane %v320_v14, %v325_v56 }
 0x163   :  { %311 = vrot.lane.b32.xlu1 %v1628_v22, %s2085_s27  ;;  %303 = vrot.lane.b32.xlu0 %v1628_v22, %s2084_s5  ;;  %v338_v24 = vsel %vm333_vm2, %v1628_v22, 0  ;;  %v2297_v27 = vpack.c.bf16 %v274_v25, %v274_v25 }
 0x164   :  { %1696 = vmatpush3.bf16.xpose.msra.mxu0 %v338_v24 }
 0x165   :  { %1707 = vmatprep.subr.bf16.mxu0 %v2082_v0  ;;  %v522_v40 = vsel %vm333_vm2, %v2297_v27, 0 }
 0x167   :  { %294 = vrot.lane.b32.xlu1 %v1626_v16, %s2085_s27  ;;  %307 = vrot.lane.b32.xlu0 %v1628_v22, %s2086_s7 }
 0x16b   :  { %290 = vrot.lane.b32.xlu0 %v1626_v16, %s2086_s7  ;;  %1698 = vmatmul.mubr.msk.bf16.vlgmr.msra.gmra.mrb[0].mxu0 %vm333_vm2, %v1626_v16 }
 0x16c   :  { %309 = vrot.lane.b32.xlu1 %v2297_v27, %s2086_s7  ;;  %1709 = vmatprep.mubr.msk.bf16.mxu0 %vm2083_vm0, %v2082_v0 }
 0x16f   :  { %305 = vrot.lane.b32.xlu0 %v2297_v27, %s2084_s5 }
 0x170   :  { %313 = vrot.lane.b32.xlu1 %v2297_v27, %s2085_s27 }
 0x173   :  { %288 = vrot.lane.b32.xlu0 %v1627_v29, %s2084_s5 }
 0x174   :  { %296 = vrot.lane.b32.xlu1 %v1627_v29, %s2085_s27 }
 0x177   :  { %292 = vrot.lane.b32.xlu0 %v1627_v29, %s2086_s7 }
 0x178   :  { %798 = vrot.lane.b32.xlu1 %v1628_v22, %s2087_s23 }
 0x1cf   :  { %v287_v30 = vpop.permute.xlu1 %286 }
 0x1d5   :  { %v2306_v31 = vpop.permute.xlu1 %311  ;;  %v2308_v32 = vpop.permute.xlu0 %303 }
 0x1d6   :  { %v384_v33 = vsel %vm333_vm2, %v2308_v32, 0  ;;  %v476_v38 = vsel %vm333_vm2, %v2306_v31, 0 }
 0x1d7   :  { %1702 = vmatpush3.bf16.xpose.msra.mxu1 %v384_v33 }
 0x1d8   :  { %1713 = vmatprep.subr.bf16.mxu1 %v2082_v0 }
 0x1d9   :  { %v295_v34 = vpop.permute.xlu1 %294  ;;  %v2313_v35 = vpop.permute.xlu0 %307 }
 0x1da   :  { %v430_v36 = vsel %vm333_vm2, %v2313_v35, 0  ;;  %v1597_v56 = vcombine.low %v2313_v35, %v2313_v35 }
 0x1db   :  { %1708 = vmatpush3.bf16.xpose.msra.mxu0 %v430_v36 }
 0x1dc   :  { %1719 = vmatprep.subr.bf16.mxu0 %v2082_v0 }
 0x1dd   :  { %v291_v37 = vpop.permute.xlu0 %290 }
 0x1de   :  { %v2320_v39 = vpop.permute.xlu1 %309  ;;  %1704 = vmatmul.mubr.msk.bf16.vlgmr.msra.gmra.mrb[8].mxu1 %vm333_vm2, %v287_v30 }
 0x1df   :  { %1714 = vmatpush3.bf16.xpose.msra.mxu1 %v476_v38  ;;  %1715 = vmatprep.mubr.msk.bf16.mxu1 %vm2083_vm0, %v2082_v0  ;;  %v614_v45 = vsel %vm333_vm2, %v2320_v39, 0 }
 0x1e0   :  { %1725 = vmatprep.subr.bf16.mxu1 %v2082_v0 }
 0x1e1   :  { %v2331_v42 = vpop.permute.xlu0 %305 }
 0x1e2   :  { %1710 = vmatmul.mubr.msk.bf16.vlgmr.msra.gmra.mrb[4].mxu0 %vm333_vm2, %v291_v37  ;;  %v2329_v41 = vpop.permute.xlu1 %313  ;;  %v568_v43 = vsel %vm333_vm2, %v2331_v42, 0 }
 0x1e3   :  { %1720 = vmatpush3.bf16.xpose.msra.mxu0 %v522_v40  ;;  %1721 = vmatprep.mubr.msk.bf16.mxu0 %vm2083_vm0, %v2082_v0  ;;  %v660_v47 = vsel %vm333_vm2, %v2329_v41, 0 }
 0x1e4   :  { %1731 = vmatprep.subr.bf16.mxu0 %v2082_v0 }
 0x1e5   :  { %v289_v46 = vpop.permute.xlu0 %288 }
 0x1e6   :  { %1716 = vmatmul.mubr.msk.bf16.vlgmr.msra.gmra.mrb[12].mxu1 %vm333_vm2, %v295_v34  ;;  %v297_v44 = vpop.permute.xlu1 %296 }
 0x1e7   :  { %1726 = vmatpush3.bf16.xpose.msra.mxu1 %v568_v43  ;;  %1727 = vmatprep.mubr.msk.bf16.mxu1 %vm2083_vm0, %v2082_v0 }
 0x1e8   :  { %1737 = vmatprep.subr.bf16.mxu1 %v2082_v0 }
 0x1e9   :  { %v293_v49 = vpop.permute.xlu0 %292 }
 0x1ea   :  { %1722 = vmatmul.mubr.msk.bf16.vlgmr.msra.gmra.mrb[8].mxu0 %vm333_vm2, %v1627_v29  ;;  %v799_v48 = vpop.permute.xlu1 %798 }
 0x1eb   :  { %1732 = vmatpush3.bf16.xpose.msra.mxu0 %v614_v45  ;;  %1733 = vmatprep.mubr.msk.bf16.mxu0 %vm2083_vm0, %v2082_v0  ;;  %v805_v50 = vsel %vm803_vm3, %v799_v48, 0 }
 0x1ec   :  { %1743 = vmatprep.subr.bf16.mxu0 %v2082_v0 }
 0x1ee   :  { %1728 = vmatmul.mubr.msk.bf16.vlgmr.msra.gmra.mrb[16].mxu1 %vm333_vm2, %v289_v46 }
 0x1ef   :  { %1738 = vmatpush3.bf16.xpose.msra.mxu1 %v660_v47  ;;  %1739 = vmatprep.mubr.msk.bf16.mxu1 %vm2083_vm0, %v2082_v0 }
 0x1f0   :  { %1749 = vmatprep.subr.bf16.mxu1 %v2082_v0 }
 0x1f2   :  { %1734 = vmatmul.mubr.msk.bf16.vlgmr.msra.gmra.mrb[12].mxu0 %vm333_vm2, %v293_v49 }
 0x1f3   :  { %1744 = vmatpush3.bf16.msra.mxu0 %v805_v50  ;;  %1745 = vmatprep.mubr.msk.bf16.mxu0 %vm2083_vm0, %v2082_v0 }
 0x1f4   :  { %1755 = vmatprep.subr.bf16.mxu0 %v2082_v0 }
 0x1f6   :  { %1740 = vmatmul.mubr.msk.bf16.vlgmr.msra.gmra.mrb[20].mxu1 %vm333_vm2, %v297_v44 }
 0x1f7   :  { %1751 = vmatprep.mubr.msk.bf16.mxu1 %vm2083_vm0, %v2082_v0 }
 0x23e   :  { %v374_v58 = vpop.f32.mrb[0].mxu0 }
 0x23f   :  { %v2365_v59 = vadd.f32 %v374_v58, %v326_v57  ;;  %v1699_v60 = vpop.f32.mrb[1].mxu0  ;;  %v1595_v58 = vcombine.low %v2308_v32, %v2308_v32 }
 0x240   :  { %v377_v61 = vpop.f32.mrb[2].mxu0 }
 0x241   :  { %v1700_v62 = vpop.f32.mrb[3].mxu0  ;;  %v702_v63 = vsel %vm333_vm2, %v2365_v59, -inf }
 0x242   :  { %703 = vmax.xlane.f32.xlu0 %v702_v63 }
 0x2b1   :  { %v420_v2 = vpop.f32.mrb[8].mxu1 }
 0x2b2   :  { %v2372_v5 = vadd.f32 %v420_v2, %v326_v57  ;;  %v1705_v6 = vpop.f32.mrb[9].mxu1 }
 0x2b3   :  { %v423_v8 = vpop.f32.mrb[10].mxu1 }
 0x2b4   :  { %v1706_v9 = vpop.f32.mrb[11].mxu1  ;;  %v705_v10 = vsel %vm333_vm2, %v2372_v5, -inf }
 0x2b5   :  { %v466_v11 = vpop.f32.mrb[4].mxu0  ;;  %706 = vmax.xlane.f32.xlu1 %v705_v10 }
 0x2b6   :  { %v467_v12 = vadd.f32 %v466_v11, %v326_v57  ;;  %v1711_v13 = vpop.f32.mrb[5].mxu0 }
 0x2b7   :  { %v469_v15 = vpop.f32.mrb[6].mxu0 }
 0x2b8   :  { %v1712_v16 = vpop.f32.mrb[7].mxu0  ;;  %v708_v17 = vsel %vm333_vm2, %v467_v12, -inf }
 0x2b9   :  { %709 = vmax.xlane.f32.xlu0 %v708_v17  ;;  %v512_v18 = vpop.f32.mrb[12].mxu1 }
 0x2ba   :  { %v513_v19 = vadd.f32 %v512_v18, %v326_v57  ;;  %v1717_v20 = vpop.f32.mrb[13].mxu1  ;;  %v1599_v57 = vcombine.low %v2306_v31, %v2306_v31 }
 0x2bb   :  { %v515_v22 = vpop.f32.mrb[14].mxu1 }
 0x2bc   :  { %v1718_v23 = vpop.f32.mrb[15].mxu1  ;;  %v711_v24 = vsel %vm333_vm2, %v513_v19, -inf }
 0x2bd   :  { %v558_v25 = vpop.f32.mrb[8].mxu0  ;;  %712 = vmax.xlane.f32.xlu0 %v711_v24 }
 0x2be   :  { %v2378_v26 = vadd.f32 %v558_v25, %v330_v21  ;;  %v1723_v28 = vpop.f32.mrb[9].mxu0 }
 0x2bf   :  { %v561_v29 = vpop.f32.mrb[10].mxu0 }
 0x2c0   :  { %v1724_v30 = vpop.f32.mrb[11].mxu0  ;;  %v714_v33 = vsel %vm333_vm2, %v2378_v26, -inf }
 0x2c1   :  { %715 = vmax.xlane.f32.xlu1 %v714_v33  ;;  %v604_v34 = vpop.f32.mrb[16].mxu1 }
 0x2c2   :  { %v2382_v36 = vadd.f32 %v604_v34, %v330_v21  ;;  %v1729_v37 = vpop.f32.mrb[17].mxu1 }
 0x2c3   :  { %v607_v38 = vpop.f32.mrb[18].mxu1 }
 0x2c4   :  { %v1730_v40 = vpop.f32.mrb[19].mxu1  ;;  %v717_v43 = vsel %vm333_vm2, %v2382_v36, -inf }
 0x2c5   :  { %v650_v44 = vpop.f32.mrb[12].mxu0  ;;  %718 = vmax.xlane.f32.xlu0 %v717_v43 }
 0x2c6   :  { %v2386_v45 = vadd.f32 %v650_v44, %v330_v21  ;;  %v1735_v46 = vpop.f32.mrb[13].mxu0 }
 0x2c7   :  { %v653_v47 = vpop.f32.mrb[14].mxu0 }
 0x2c8   :  { %v1736_v48 = vpop.f32.mrb[15].mxu0  ;;  %v720_v49 = vsel %vm333_vm2, %v2386_v45, -inf }
 0x2c9   :  { %721 = vmax.xlane.f32.xlu1 %v720_v49  ;;  %v696_v50 = vpop.f32.mrb[20].mxu1  ;;  %v1606_v49 = vcombine.low %v2329_v41, %v2329_v41 }
 0x2ca   :  { %v697_v51 = vadd.f32 %v696_v50, %v330_v21  ;;  %v1741_v52 = vpop.f32.mrb[21].mxu1 }
 0x2cb   :  { %v699_v53 = vpop.f32.mrb[22].mxu1 }
 0x2cc   :  { %v1742_v54 = vpop.f32.mrb[23].mxu1  ;;  %v723_v55 = vsel %vm333_vm2, %v697_v51, -inf }
 0x2cd   :  { %724 = vmax.xlane.f32.xlu0 %v723_v55 }
 0x2cf   :  { %v704_v60 = vpop.xlane.xlu0 %703 }
 0x2d0   :  { %v726_v61 = vsub.f32 %v2365_v59, %v704_v60 }
 0x2d2   :  { %v734_v62 = vmul.f32 1.442695, %v726_v61 }
 0x2d4   :  { %1866 = vpow2.f32 %v734_v62 }
 0x2da   :  { %899 = vrot.lane.b32.xlu1 %v1597_v56, %s2087_s23 }
 0x2de   :  { %949 = vrot.lane.b32.xlu1 %v1599_v57, %s2087_s23  ;;  %v2401_v63 = vpop.eup %1866 }
 0x2df   :  { %v750_v35 = vsel %vm333_vm2, %v2401_v63, 0.0 }
 0x2e3   :  { %849 = vrot.lane.b32.xlu0 %v1595_v58, %s2087_s23 }
 0x302   :  { %751 = vadd.xlane.f32.xlu1 %v750_v35 }
 0x342   :  { %v707_v1 = vpop.xlane.xlu1 %706 }
 0x343   :  { %v727_v31 = vsub.f32 %v2372_v5, %v707_v1 }
 0x345   :  { %v736_v2 = vmul.f32 1.442695, %v727_v31 }
 0x346   :  { %v710_v6 = vpop.xlane.xlu0 %709 }
 0x347   :  { %1868 = vpow2.f32 %v736_v2  ;;  %v728_v32 = vsub.f32 %v467_v12, %v710_v6 }
 0x349   :  { %v738_v7 = vmul.f32 1.442695, %v728_v32 }
 0x34a   :  { %v713_v8 = vpop.xlane.xlu0 %712 }
 0x34b   :  { %1870 = vpow2.f32 %v738_v7  ;;  %v729_v9 = vsub.f32 %v513_v19, %v713_v8  ;;  %v1602_v19 = vcombine.low %v2331_v42, %v2331_v42 }
 0x34d   :  { %v740_v59 = vmul.f32 1.442695, %v729_v9 }
 0x34e   :  { %v716_v20 = vpop.xlane.xlu1 %715 }
 0x34f   :  { %1872 = vpow2.f32 %v740_v59  ;;  %v730_v21 = vsub.f32 %v2378_v26, %v716_v20 }
 0x351   :  { %v2406_v10 = vpop.eup %1868  ;;  %v742_v24 = vmul.f32 1.442695, %v730_v21 }
 0x352   :  { %v753_v11 = vsel %vm333_vm2, %v2406_v10, 0.0  ;;  %v719_v14 = vpop.xlane.xlu0 %718 }
 0x353   :  { %754 = vadd.xlane.f32.xlu0 %v753_v11  ;;  %v731_v23 = vsub.f32 %v2382_v36, %v719_v14  ;;  %1874 = vpow2.f32 %v742_v24 }
 0x355   :  { %v2410_v13 = vpop.eup %1870  ;;  %v744_v28 = vmul.f32 1.442695, %v731_v23 }
 0x356   :  { %v756_v5 = vsel %vm333_vm2, %v2410_v13, 0.0  ;;  %v722_v22 = vpop.xlane.xlu1 %721 }
 0x357   :  { %757 = vadd.xlane.f32.xlu1 %v756_v5  ;;  %v732_v25 = vsub.f32 %v2386_v45, %v722_v22  ;;  %1876 = vpow2.f32 %v744_v28 }
 0x359   :  { %v2414_v12 = vpop.eup %1872  ;;  %v746_v29 = vmul.f32 1.442695, %v732_v25 }
 0x35a   :  { %v725_v15 = vpop.xlane.xlu0 %724  ;;  %v759_v16 = vsel %vm333_vm2, %v2414_v12, 0.0  ;;  %v900_v33 = vpop.permute.xlu1 %899 }
 0x35b   :  { %760 = vadd.xlane.f32.xlu0 %v759_v16  ;;  %v733_v30 = vsub.f32 %v697_v51, %v725_v15  ;;  %1878 = vpow2.f32 %v746_v29  ;;  %v905_v50 = vsel %vm803_vm3, %v900_v33, 0  ;;  %v1604_v51 = vcombine.low %v2320_v39, %v2320_v39 }
 0x35d   :  { %v748_v42 = vmul.f32 1.442695, %v733_v30  ;;  %v2428_v34 = vpop.eup %1874 }
 0x35e   :  { %v850_v17 = vpop.permute.xlu0 %849  ;;  %v950_v26 = vpop.permute.xlu1 %949  ;;  %v762_v36 = vsel %vm333_vm2, %v2428_v34, 0.0 }
 0x35f   :  { %v855_v18 = vsel %vm803_vm3, %v850_v17, 0  ;;  %1880 = vpow2.f32 %v748_v42  ;;  %v955_v58 = vsel %vm803_vm3, %v950_v26, 0 }
 0x360   :  { %1750 = vmatpush3.bf16.msra.mxu1 %v855_v18 }
 0x361   :  { %1761 = vmatprep.subr.bf16.mxu1 %v2082_v0 }
 0x368   :  { %1047 = vrot.lane.b32.xlu1 %v1602_v19, %s2087_s23 }
 0x371   :  { %997 = vrot.lane.b32.xlu0 %v2297_v27, %s2087_s23  ;;  %v2430_v27 = vpop.eup %1876 }
 0x372   :  { %v2434_v37 = vpop.eup %1878  ;;  %v765_v43 = vsel %vm333_vm2, %v2430_v27, 0.0 }
 0x373   :  { %v768_v40 = vsel %vm333_vm2, %v2434_v37, 0.0  ;;  %v2440_v44 = vpop.eup %1880 }
 0x374   :  { %v771_v45 = vsel %vm333_vm2, %v2440_v44, 0.0 }
 0x38c   :  { %763 = vadd.xlane.f32.xlu1 %v762_v36 }
 0x38f   :  { %v752_v38 = vpop.xlane.xlu1 %751 }
 0x390   :  { %1882 = vrcp.f32 %v752_v38  ;;  %769 = vadd.xlane.f32.xlu1 %v768_v40  ;;  %766 = vadd.xlane.f32.xlu0 %v765_v43 }
 0x394   :  { %772 = vadd.xlane.f32.xlu0 %v771_v45  ;;  %v1858_v45 = vld [vmem:[#allocation8] sm:$0xff]  }
 0x39a   :  { %v1883_v46 = vpop.eup %1882 }
 0x39b   :  { %v782_v47 = vmul.f32 %v1883_v46, %v2401_v63 }
 0x39d   :  { %v790_v48 = vpack.c.bf16 %v782_v47, %v782_v47 }
 0x39f   :  { %1746 = vmatmul.mubr.msk.bf16.vlgmr.msra.gmra.mrb[16].mxu0 %vm333_vm2, %v790_v48 }
 0x3a0   :  { %1756 = vmatpush3.bf16.msra.mxu0 %v905_v50  ;;  %1757 = vmatprep.mubr.msk.bf16.mxu0 %vm2083_vm0, %v2082_v0 }
 0x3a1   :  { %1147 = vrot.lane.b32.xlu1 %v1606_v49, %s2087_s23  ;;  %1767 = vmatprep.subr.bf16.mxu0 %v2082_v0  ;;  %v1859_v49 = vld [vmem:[#allocation8 + $0x8] sm:$0xff]  }
 0x3aa   :  { %1097 = vrot.lane.b32.xlu0 %v1604_v51, %s2087_s23 }
 0x3e0   :  { %v755_v52 = vpop.xlane.xlu0 %754 }
 0x3e1   :  { %1884 = vrcp.f32 %v755_v52 }
 0x3e4   :  { %v758_v41 = vpop.xlane.xlu1 %757 }
 0x3e5   :  { %1886 = vrcp.f32 %v758_v41 }
 0x3e8   :  { %v761_v53 = vpop.xlane.xlu0 %760  ;;  %v1048_v1 = vpop.permute.xlu1 %1047 }
 0x3e9   :  { %1888 = vrcp.f32 %v761_v53  ;;  %v1053_v2 = vsel %vm803_vm3, %v1048_v1, 0 }
 0x3eb   :  { %v1885_v54 = vpop.eup %1884 }
 0x3ec   :  { %v783_v55 = vmul.f32 %v1885_v54, %v2406_v10  ;;  %v998_v39 = vpop.permute.xlu0 %997 }
 0x3ed   :  { %v1003_v35 = vsel %vm803_vm3, %v998_v39, 0 }
 0x3ee   :  { %v791_v56 = vpack.c.bf16 %v783_v55, %v783_v55 }
 0x3ef   :  { %v1887_v57 = vpop.eup %1886 }
 0x3f0   :  { %v784_v60 = vmul.f32 %v1887_v57, %v2410_v13  ;;  %1752 = vmatmul.mubr.msk.bf16.vlgmr.msra.gmra.mrb[24].mxu1 %vm333_vm2, %v791_v56 }
 0x3f1   :  { %1762 = vmatpush3.bf16.msra.mxu1 %v955_v58  ;;  %1763 = vmatprep.mubr.msk.bf16.mxu1 %vm2083_vm0, %v2082_v0 }
 0x3f2   :  { %v792_v61 = vpack.c.bf16 %v784_v60, %v784_v60  ;;  %1773 = vmatprep.subr.bf16.mxu1 %v2082_v0 }
 0x3f3   :  { %v1889_v62 = vpop.eup %1888 }
 0x3f4   :  { %v785_v63 = vmul.f32 %v1889_v62, %v2414_v12  ;;  %1758 = vmatmul.mubr.msk.bf16.vlgmr.msra.gmra.mrb[20].mxu0 %vm333_vm2, %v792_v61 }
 0x3f5   :  { %1768 = vmatpush3.bf16.msra.mxu0 %v1003_v35  ;;  %1769 = vmatprep.mubr.msk.bf16.mxu0 %vm2083_vm0, %v2082_v0 }
 0x3f6   :  { %v793_v31 = vpack.c.bf16 %v785_v63, %v785_v63  ;;  %1779 = vmatprep.subr.bf16.mxu0 %v2082_v0 }
 0x3f8   :  { %1764 = vmatmul.mubr.msk.bf16.vlgmr.msra.gmra.mrb[28].mxu1 %vm333_vm2, %v793_v31 }
 0x3f9   :  { %1774 = vmatpush3.bf16.msra.mxu1 %v1053_v2  ;;  %1775 = vmatprep.mubr.msk.bf16.mxu1 %vm2083_vm0, %v2082_v0 }
 0x3fa   :  { %1785 = vmatprep.subr.bf16.mxu1 %v2082_v0 }
 0x419   :  { %v764_v6 = vpop.xlane.xlu1 %763 }
 0x41a   :  { %1890 = vrcp.f32 %v764_v6 }
 0x41d   :  { %v770_v32 = vpop.xlane.xlu1 %769  ;;  %v767_v7 = vpop.xlane.xlu0 %766 }
 0x41e   :  { %1892 = vrcp.f32 %v770_v32 }
 0x41f   :  { %1894 = vrcp.f32 %v767_v7 }
 0x421   :  { %v773_v8 = vpop.xlane.xlu0 %772  ;;  %v1148_v16 = vpop.permute.xlu1 %1147 }
 0x422   :  { %1896 = vrcp.f32 %v773_v8  ;;  %v1153_v19 = vsel %vm803_vm3, %v1148_v16, 0 }
 0x424   :  { %v1891_v9 = vpop.eup %1890 }
 0x425   :  { %v786_v59 = vmul.f32 %v1891_v9, %v2428_v34  ;;  %v1098_v10 = vpop.permute.xlu0 %1097 }
 0x426   :  { %v1103_v5 = vsel %vm803_vm3, %v1098_v10, 0 }
 0x427   :  { %v794_v11 = vpack.c.bf16 %v786_v59, %v786_v59 }
 0x428   :  { %v1893_v13 = vpop.eup %1892 }
 0x429   :  { %v1895_v14 = vpop.eup %1894  ;;  %1770 = vmatmul.mubr.msk.bf16.vlgmr.msra.gmra.mrb[24].mxu0 %vm333_vm2, %v794_v11  ;;  %v788_v15 = vmul.f32 %v1893_v13, %v2434_v37 }
 0x42a   :  { %v787_v12 = vmul.f32 %v1895_v14, %v2430_v27  ;;  %1780 = vmatpush3.bf16.msra.mxu0 %v1103_v5  ;;  %1781 = vmatprep.mubr.msk.bf16.mxu0 %vm2083_vm0, %v2082_v0 }
 0x42b   :  { %1791 = vmatprep.subr.bf16.mxu0 %v2082_v0  ;;  %v796_v20 = vpack.c.bf16 %v788_v15, %v788_v15  ;;  %v1608_v15 = vld [vmem:[#allocation10] ss:$0 sm:$0xff] }
 0x42c   :  { %v795_v17 = vpack.c.bf16 %v787_v12, %v787_v12  ;;  %v1897_v18 = vpop.eup %1896 }
 0x42d   :  { %v789_v21 = vmul.f32 %v1897_v18, %v2440_v44 }
 0x42e   :  { %1776 = vmatmul.mubr.msk.bf16.vlgmr.msra.gmra.mrb[32].mxu1 %vm333_vm2, %v795_v17 }
 0x42f   :  { %1786 = vmatpush3.bf16.msra.mxu1 %v1153_v19  ;;  %1787 = vmatprep.mubr.msk.bf16.mxu1 %vm2083_vm0, %v2082_v0  ;;  %v797_v22 = vpack.c.bf16 %v789_v21, %v789_v21 }
 0x430   :  { %1799 = vmatprep.subr.bf16.mxu1 %v2082_v0 }
 0x431   :  { %1782 = vmatmul.mubr.msk.bf16.vlgmr.msra.gmra.mrb[28].mxu0 %vm333_vm2, %v796_v20 }
 0x432   :  { %1795 = vmatprep.mubr.msk.bf16.mxu0 %vm2083_vm0, %v2082_v0  ;;  %1792 = vmatpush3.bf16.msra.mxu0 %v1858_v45 }
 0x433   :  { %1793 = vmatprep.subr.bf16.mxu0 %v2082_v0 }
 0x436   :  { %1788 = vmatmul.mubr.msk.bf16.vlgmr.msra.gmra.mrb[36].mxu1 %vm333_vm2, %v797_v22  ;;  %1794 = vmatpush3.bf16.msra.mxu0 %v1859_v49 }
 0x437   :  { %1803 = vmatprep.mubr.msk.bf16.mxu1 %vm2083_vm0, %v2082_v0  ;;  %1807 = vmatprep.subr.bf16.mxu0 %v2082_v0 }
 0x472   :  { %v841_v23 = vpop.f32.mrb[16].mxu0 }
 0x473   :  { %v1747_v24 = vpop.f32.mrb[17].mxu0 }
 0x474   :  { %v844_v25 = vpop.f32.mrb[18].mxu0 }
 0x475   :  { %v1748_v28 = vpop.f32.mrb[19].mxu0 }
 0x4c3   :  { %v891_v29 = vpop.f32.mrb[24].mxu1 }
 0x4c4   :  { %v1753_v30 = vpop.f32.mrb[25].mxu1 }
 0x4c5   :  { %v894_v42 = vpop.f32.mrb[26].mxu1 }
 0x4c6   :  { %v1754_v33 = vpop.f32.mrb[27].mxu1 }
 0x4c7   :  { %v941_v34 = vpop.f32.mrb[20].mxu0 }
 0x4c8   :  { %v1759_v27 = vpop.f32.mrb[21].mxu0 }
 0x4c9   :  { %v944_v26 = vpop.f32.mrb[22].mxu0 }
 0x4ca   :  { %v1760_v36 = vpop.f32.mrb[23].mxu0 }
 0x4cb   :  { %v991_v37 = vpop.f32.mrb[28].mxu1 }
 0x4cc   :  { %v1765_v38 = vpop.f32.mrb[29].mxu1 }
 0x4cd   :  { %v994_v40 = vpop.f32.mrb[30].mxu1 }
 0x4ce   :  { %v1766_v43 = vpop.f32.mrb[31].mxu1 }
 0x4fc   :  { %v1039_v44 = vpop.f32.mrb[24].mxu0 }
 0x4fd   :  { %v1771_v46 = vpop.f32.mrb[25].mxu0 }
 0x4fe   :  { %v1042_v47 = vpop.f32.mrb[26].mxu0 }
 0x4ff   :  { %v1772_v48 = vpop.f32.mrb[27].mxu0 }
 0x500   :  { %v1612_v48 = vld [vmem:[#allocation11] ss:$0 sm:$0xff] }
 0x501   :  { %v1089_v50 = vpop.f32.mrb[32].mxu1 }
 0x502   :  { %v1838_v51 = vpack.i.bf16 %v1089_v50, %v891_v29  ;;  %v1777_v52 = vpop.f32.mrb[33].mxu1 }
 0x503   :  { %v1092_v41 = vpop.f32.mrb[34].mxu1 }
 0x504   :  { %1839 = vrot.lane.b32.xlu0 %v1838_v51, %s2088_s2  ;;  %v1778_v53 = vpop.f32.mrb[35].mxu1  ;;  %v1139_v54 = vpop.f32.mrb[28].mxu0  ;;  %v1613_v41 = vld [vmem:[%s2575_s10] ss:$0 sm:$0xff] }
 0x505   :  { %v1843_v55 = vpack.i.bf16 %v1139_v54, %v941_v34  ;;  %v1783_v56 = vpop.f32.mrb[29].mxu0 }
 0x506   :  { %v1142_v57 = vpop.f32.mrb[30].mxu0 }
 0x507   :  { %1844 = vrot.lane.b32.xlu1 %v1843_v55, %s2089_s24  ;;  %v1784_v58 = vpop.f32.mrb[31].mxu0  ;;  %v1862_v57 = vld [vmem:[%s2578_s13] sm:$0xff]  }
 0x508   :  { %v1863_v58 = vld [vmem:[%s2578_s13 + $0x8] sm:$0xff]  }
 0x509   :  { %v1189_v60 = vpop.f32.mrb[36].mxu1 }
 0x50a   :  { %v1848_v39 = vpack.i.bf16 %v1189_v60, %v991_v37  ;;  %v1789_v61 = vpop.f32.mrb[37].mxu1  ;;  %v1861_v37 = vld [vmem:[%s2576_s11 + $0x8] sm:$0xff]   ;;  %v1864_v60 = vld [vmem:[%s2578_s13 + $0x10] sm:$0xff]  }
 0x50b   :  { %v1192_v62 = vpop.f32.mrb[38].mxu1  ;;  %v1614_v61 = vld [vmem:[%s2577_s12] ss:$0 sm:$0xff] }
 0x50c   :  { %1849 = vrot.lane.b32.xlu0 %v1848_v39, %s2090_s9  ;;  %v1790_v63 = vpop.f32.mrb[39].mxu1  ;;  %v1865_v39 = vld [vmem:[%s2578_s13 + $0x18] sm:$0xff]  }
 0x576   :  { %v1840_v35 = vpop.permute.xlu0 %1839 }
 0x577   :  { %v1842_v31 = vunpack.i.h.bf16 %v1840_v35  ;;  %v1841_v2 = vunpack.i.l.bf16 %v1840_v35 }
 0x579   :  { %v1845_v1 = vpop.permute.xlu1 %1844  ;;  %v1220_v8 = vsel %vm333_vm2, %v1039_v44, %v1842_v31  ;;  %v1219_v9 = vsel %vm333_vm2, %v841_v23, %v1841_v2 }
 0x57a   :  { %v1847_v6 = vunpack.i.h.bf16 %v1845_v1  ;;  %v1846_v32 = vunpack.i.l.bf16 %v1845_v1 }
 0x57c   :  { %v1222_v11 = vsel %vm1221_vm4, %v1219_v9, %v1846_v32  ;;  %v1223_v13 = vsel %vm1221_vm4, %v1220_v8, %v1847_v6 }
 0x57e   :  { %v1850_v7 = vpop.permute.xlu0 %1849 }
 0x57f   :  { %v1852_v59 = vunpack.i.h.bf16 %v1850_v7  ;;  %v1851_v10 = vunpack.i.l.bf16 %v1850_v7 }
 0x581   :  { %v1226_v14 = vsel %vm1224_vm5, %v1223_v13, %v1852_v59  ;;  %v1225_v5 = vsel %vm1224_vm5, %v1222_v11, %v1851_v10 }
 0x582   :  { %v1227_v12 = vpack.c.bf16 %v1226_v14, %v1225_v5  ;;  %v1618_v5 = vld [vmem:[%s2579_s14] ss:$0 sm:$0xff] }
 0x584   :  { %1796 = vmatmul.mubr.msk.bf16.vlgmr.msra.gmra.mrb[32].mxu0 %vm160_vm1, %v1227_v12 }
 0x585   :  { %1815 = vmatprep.mubr.msk.bf16.mxu0 %vm2083_vm0, %v2082_v0  ;;  %1808 = vmatpush3.bf16.msra.mxu0 %v1862_v57 }
 0x586   :  { %1809 = vmatprep.subr.bf16.mxu0 %v2082_v0 }
 0x589   :  { %1810 = vmatpush3.bf16.msra.mxu0 %v1863_v58 }
 0x58a   :  { %1811 = vmatprep.subr.bf16.mxu0 %v2082_v0 }
 0x58d   :  { %1812 = vmatpush3.bf16.msra.mxu0 %v1864_v60 }
 0x58e   :  { %1813 = vmatprep.subr.bf16.mxu0 %v2082_v0 }
 0x591   :  { %1814 = vmatpush3.bf16.msra.mxu0 %v1865_v39 }
 0x657   :  { %v1288_v16 = vpop.f32.mrb[32].mxu0 }
 0x658   :  { %v1289_v17 = vadd.f32 %v1608_v15, %v1288_v16  ;;  %v1797_v18 = vpop.f32.mrb[33].mxu0 }
 0x659   :  { %v1291_v19 = vpop.f32.mrb[34].mxu0 }
 0x65a   :  { %v1292_v20 = vadd.f32 %v1608_v15, %v1291_v19  ;;  %v1798_v21 = vpop.f32.mrb[35].mxu0  ;;  %v1295_v22 = vadd.f32 %v1289_v17, %v2270_v3 }
 0x65c   :  { %v1299_v23 = vsel %vm160_vm1, %v1295_v22, 0.0  ;;  %v1296_v24 = vadd.f32 %v1292_v20, %v2275_v4  ;;  %v1860_v4 = vld [vmem:[%s2576_s11] sm:$0xff]  }
 0x65d   :  { %1300 = vadd.xlane.f32.xlu1 %v1299_v23  ;;  %1800 = vmatpush3.bf16.msra.mxu1 %v1860_v4 }
 0x65e   :  { %v1302_v25 = vsel %vm160_vm1, %v1296_v24, 0.0  ;;  %1801 = vmatprep.subr.bf16.mxu1 %v2082_v0 }
 0x65f   :  { %1303 = vadd.xlane.f32.xlu0 %v1302_v25 }
 0x661   :  { %1802 = vmatpush3.bf16.msra.mxu1 %v1861_v37 }
 0x6ea   :  { %v1301_v28 = vpop.xlane.xlu1 %1300 }
 0x6eb   :  { %v1306_v29 = vmul.f32 0.03125, %v1301_v28 }
 0x6ec   :  { %v1304_v30 = vpop.xlane.xlu0 %1303 }
 0x6ed   :  { %v1308_v42 = vsub.f32 %v1295_v22, %v1306_v29  ;;  %v1307_v33 = vmul.f32 0.03125, %v1304_v30 }
 0x6ef   :  { %v1309_v34 = vsub.f32 %v1296_v24, %v1307_v33  ;;  %v1310_v27 = vmul.f32 %v1308_v42, %v1308_v42 }
 0x6f1   :  { %v1312_v26 = vsel %vm160_vm1, %v1310_v27, 0.0  ;;  %v1311_v36 = vmul.f32 %v1309_v34, %v1309_v34 }
 0x6f2   :  { %1313 = vadd.xlane.f32.xlu0 %v1312_v26 }
 0x6f3   :  { %v1315_v3 = vsel %vm160_vm1, %v1311_v36, 0.0 }
 0x6f4   :  { %1316 = vadd.xlane.f32.xlu1 %v1315_v3 }
 0x77f   :  { %v1314_v38 = vpop.xlane.xlu0 %1313 }
 0x780   :  { %v1318_v40 = vmul.f32 0.03125, %v1314_v38 }
 0x781   :  { %v1317_v43 = vpop.xlane.xlu1 %1316 }
 0x782   :  { %v1320_v44 = vadd.f32 1e-12, %v1318_v40  ;;  %v1319_v45 = vmul.f32 0.03125, %v1317_v43 }
 0x784   :  { %1898 = vrsqrt.f32 %v1320_v44  ;;  %v1321_v46 = vadd.f32 1e-12, %v1319_v45  ;;  %v1624_v44 = vld [vmem:[%s2580_s15] ss:$0 sm:$0xff] }
 0x786   :  { %1900 = vrsqrt.f32 %v1321_v46 }
 0x78e   :  { %v1899_v47 = vpop.eup %1898 }
 0x78f   :  { %v1324_v49 = vmul.f32 %v1899_v47, %v1308_v42  ;;  %v1625_v47 = vld [vmem:[%s2581_s16] ss:$0 sm:$0xff] }
 0x790   :  { %v1901_v50 = vpop.eup %1900 }
 0x791   :  { %v1332_v51 = vmul.f32 %v1612_v48, %v1324_v49  ;;  %v1325_v52 = vmul.f32 %v1901_v50, %v1309_v34 }
 0x793   :  { %v1333_v53 = vmul.f32 %v1612_v48, %v1325_v52  ;;  %v1340_v54 = vadd.f32 %v1613_v41, %v1332_v51 }
 0x795   :  { %v1341_v55 = vadd.f32 %v1613_v41, %v1333_v53 }
 0x797   :  { %v1342_v56 = vpack.c.bf16 %v1341_v55, %v1340_v54 }
 0x799   :  { %1804 = vmatmul.mubr.msk.bf16.vlgmr.msra.gmra.mrb[40].mxu1 %vm160_vm1, %v1342_v56 }
 0x86c   :  { %v1403_v62 = vpop.f32.mrb[40].mxu1 }
 0x86d   :  { %v1404_v63 = vadd.f32 %v1614_v61, %v1403_v62  ;;  %v1805_v35 = vpop.f32.mrb[41].mxu1 }
 0x86e   :  { %v1406_v1 = vpop.f32.mrb[42].mxu1 }
 0x86f   :  { %v1412_v31 = vmul.f32 0.70710677, %v1404_v63  ;;  %v1407_v2 = vadd.f32 %v1614_v61, %v1406_v1  ;;  %v1806_v6 = vpop.f32.mrb[43].mxu1  ;;  %v1410_v9 = vmul.f32 0.5, %v1404_v63 }
 0x871   :  { %1902 = verf.f32 %v1412_v31  ;;  %v1413_v32 = vmul.f32 0.70710677, %v1407_v2  ;;  %v1411_v59 = vmul.f32 0.5, %v1407_v2 }
 0x873   :  { %1904 = verf.f32 %v1413_v32 }
 0x87b   :  { %v1903_v0 = vpop.eup %1902 }
 0x87c   :  { %v1416_v7 = vadd.f32 1.0, %v1903_v0 }
 0x87d   :  { %v1905_v8 = vpop.eup %1904 }
 0x87e   :  { %v1417_v10 = vadd.f32 1.0, %v1905_v8  ;;  %v1418_v11 = vmul.f32 %v1416_v7, %v1410_v9 }
 0x880   :  { %v1419_v13 = vmul.f32 %v1417_v10, %v1411_v59 }
 0x882   :  { %v1420_v14 = vpack.c.bf16 %v1419_v13, %v1418_v11 }
 0x884   :  { %1816 = vmatmul.mubr.msk.bf16.vlgmr.msra.gmra.mrb[36].mxu0 %vm1460_vm6, %v1420_v14 }
 0x957   :  { %v1498_v12 = vpop.f32.mrb[36].mxu0 }
 0x958   :  { %v1499_v15 = vadd.f32 %v1618_v5, %v1498_v12  ;;  %v1817_v16 = vpop.f32.mrb[37].mxu0 }
 0x959   :  { %v1501_v17 = vpop.f32.mrb[38].mxu0 }
 0x95a   :  { %v1502_v18 = vadd.f32 %v1618_v5, %v1501_v17  ;;  %v1818_v19 = vpop.f32.mrb[39].mxu0  ;;  %v1505_v20 = vadd.f32 %v1499_v15, %v1340_v54 }
 0x95c   :  { %v1509_v21 = vsel %vm160_vm1, %v1505_v20, 0.0  ;;  %v1506_v22 = vadd.f32 %v1502_v18, %v1341_v55 }
 0x95d   :  { %1510 = vadd.xlane.f32.xlu0 %v1509_v21 }
 0x95e   :  { %v1512_v23 = vsel %vm160_vm1, %v1506_v22, 0.0 }
 0x95f   :  { %1513 = vadd.xlane.f32.xlu1 %v1512_v23 }
 0x9ea   :  { %v1511_v24 = vpop.xlane.xlu0 %1510 }
 0x9eb   :  { %v1515_v25 = vmul.f32 0.03125, %v1511_v24 }
 0x9ec   :  { %v1514_v28 = vpop.xlane.xlu1 %1513 }
 0x9ed   :  { %v1517_v29 = vsub.f32 %v1505_v20, %v1515_v25  ;;  %v1516_v30 = vmul.f32 0.03125, %v1514_v28 }
 0x9ef   :  { %v1518_v42 = vsub.f32 %v1506_v22, %v1516_v30  ;;  %v1519_v33 = vmul.f32 %v1517_v29, %v1517_v29 }
 0x9f1   :  { %v1521_v34 = vsel %vm160_vm1, %v1519_v33, 0.0  ;;  %v1520_v27 = vmul.f32 %v1518_v42, %v1518_v42 }
 0x9f2   :  { %1522 = vadd.xlane.f32.xlu0 %v1521_v34 }
 0x9f3   :  { %v1524_v26 = vsel %vm160_vm1, %v1520_v27, 0.0 }
 0x9f4   :  { %1525 = vadd.xlane.f32.xlu1 %v1524_v26 }
 0xa7f   :  { %v1523_v36 = vpop.xlane.xlu0 %1522 }
 0xa80   :  { %v1527_v3 = vmul.f32 0.03125, %v1523_v36 }
 0xa81   :  { %v1526_v4 = vpop.xlane.xlu1 %1525 }
 0xa82   :  { %v1529_v37 = vadd.f32 1e-12, %v1527_v3  ;;  %v1528_v38 = vmul.f32 0.03125, %v1526_v4 }
 0xa84   :  { %1906 = vrsqrt.f32 %v1529_v37  ;;  %v1530_v40 = vadd.f32 1e-12, %v1528_v38 }
 0xa86   :  { %1908 = vrsqrt.f32 %v1530_v40 }
 0xa8e   :  { %v1907_v43 = vpop.eup %1906 }
 0xa8f   :  { %v1533_v45 = vmul.f32 %v1907_v43, %v1517_v29 }
 0xa90   :  { %v1909_v46 = vpop.eup %1908 }
 0xa91   :  { %v1541_v48 = vmul.f32 %v1624_v44, %v1533_v45  ;;  %v1534_v49 = vmul.f32 %v1909_v46, %v1518_v42 }
 0xa93   :  { %v1542_v50 = vmul.f32 %v1624_v44, %v1534_v49  ;;  %v1549_v51 = vadd.f32 %v1625_v47, %v1541_v48 }
 0xa95   :  { %v1550_v52 = vadd.f32 %v1625_v47, %v1542_v50  ;;  %1551 = vst.msk [vmem:[#allocation13] sm:$0xff] %vm160_vm1, %v1549_v51 }
 0xa97   :  { %1552 = vst.msk [vmem:[#allocation13 + $0x8] sm:$0xff] %vm160_vm1, %v1550_v52 }
 0xa98   :  { %2053 = shalt.err (!%p2050_p10)
}
 0xa99   :  { %s2054_s24 = scalar_lea.hbm %s2582_s17, 256 }
 0xa9a   :  { %p2055_p11 = scmp.ne.s32.totalorder %s2582_s17, %s2054_s24  ;;  %p2058_p12 = scmp.lt.u32.totalorder %s2054_s24, %s2582_s17 }
 0xa9c   :  { %p2060_p13 = pnand %p2058_p12, %p2055_p11 }
 0xa9e   :  { %2063 = shalt.err (!%p2060_p13)
}
 0xa9f   :  { %s2092_s30 = smov 128  }
 0xaa0   :  { %1564 = dma.vmem_to_hbm [thread:$0]  %s1559_s8, 256, %s2582_s17, [#allocation4], %s2092_s30, %s2092_s30, %s2088_s2  }
 0xaa1   :  { %2072 = dma.done.wait [#allocation4], 256  }
 0xaa2   :  { %2073 = vsyncadd [#allocation4], 4294967040 }
 0xaa3   :  { %1568 = vsyncpa [#allocation3], 1 }
 0xaa4   :  { %1569 = vsyncpa [#allocation6], 1 }
 0xaa5   :  { %1570 = vsyncpa [#allocation9], 1 }
 0xaa6   :  { %1571 = vsyncpa [#allocation12], 1 }
 0xaa7   :  { %1572 = vsyncpa [#allocation4], 1 }

</bundles_post_ra>
